<compile_context>
chip_gen: v6e
topology: v6e:2x2x1
jax: 0.10.0
libtpu: 0.0.40
codegen_flags: <defaults>
</compile_context>

<pallas_src>
import jax
import jax.numpy as jnp
from jax import lax
from jax.experimental import pallas as pl
from jax.experimental.pallas import tpu as pltpu

N_EMBD = 128
N_HEAD = 8
HEAD_SIZE = N_EMBD // N_HEAD   # 16
LN_EPS = 1e-5                  # torch.nn.LayerNorm default
NEG_BIG = -1e30                # additive causal-mask bias (safer than -inf)


def _layernorm(x, gamma, beta):
    mu = jnp.mean(x, axis=-1, keepdims=True)
    var = jnp.mean(jnp.square(x - mu), axis=-1, keepdims=True)
    return (x - mu) * lax.rsqrt(var + LN_EPS) * gamma + beta


def block_kernel(x_ref,
                 wqkv_ref,        # (E, 3E)  bf16  [Wq*scale | Wk | Wv], head-blocked cols
                 wp_ref,          # (E, E)   bf16
                 wgu_ref,         # (E, 8E)  bf16  [Wgate | Wup]
                 wd_ref,          # (4E, E)  bf16
                 vecs_ref,        # (6, E)   f32   [g1, b1, g2, b2, b_proj, b_down]
                 bgu_ref,         # (1, 8E)  f32   [b_gate | b_up]
                 o_ref):
    E, H, HS = N_EMBD, N_HEAD, HEAD_SIZE
    x = x_ref[0]                                   # (T, E) f32, this batch element
    T = x.shape[0]

    g1 = vecs_ref[0]
    b1 = vecs_ref[1]
    g2 = vecs_ref[2]
    b2 = vecs_ref[3]
    bp = vecs_ref[4]
    bd = vecs_ref[5]

    # ---- LN1 + multi-head causal self-attention ----
    xn = _layernorm(x, g1, b1)                                        # f32
    # fused QKV: one (T,E) @ (E,3E) bf16 matmul, f32 accumulation.
    # The score scale 1/sqrt(E) is already folded into the Q columns.
    qkv = jnp.dot(xn.astype(jnp.bfloat16), wqkv_ref[...],
                  preferred_element_type=jnp.float32)                 # (T, 3E)
    qkv_b = qkv.astype(jnp.bfloat16)

    def split_heads(m):                            # (T, E) -> (H, T, HS)
        return jnp.swapaxes(m.reshape(T, H, HS), 0, 1)

    q = split_heads(qkv_b[:, :E])
    k = split_heads(qkv_b[:, E:2 * E])
    v = split_heads(qkv_b[:, 2 * E:])

    # one additive causal bias shared by every head (no per-head select)
    row = lax.broadcasted_iota(jnp.int32, (T, T), 0)
    col = lax.broadcasted_iota(jnp.int32, (T, T), 1)
    bias = jnp.where(row >= col, 0.0, NEG_BIG).astype(jnp.float32)    # (T, T)

    # all heads in one batched MXU matmul (scale pre-folded into Wq)
    s = jnp.einsum('hqd,hkd->hqk', q, k,
                   preferred_element_type=jnp.float32) + bias         # (H, T, T)
    m = jnp.max(s, axis=-1, keepdims=True)
    e = jnp.exp(s - m)
    denom = jnp.sum(e, axis=-1, keepdims=True)
    p = e * pl.reciprocal(denom, approx=True)      # softmax; divide on EUP slot
    # attn dropout = identity (inference)
    ctx = jnp.einsum('hqk,hkd->hqd', p.astype(jnp.bfloat16), v,
                     preferred_element_type=jnp.float32)              # (H, T, HS)

    # concatenate heads -> single K=128 output-projection matmul
    ctx_flat = jnp.swapaxes(ctx, 0, 1).reshape(T, E)                  # (T, E)
    att = jnp.dot(ctx_flat.astype(jnp.bfloat16), wp_ref[...],
                  preferred_element_type=jnp.float32) + bp
    x1 = x + att

    # ---- LN2 + gated (GLU) feed-forward ----
    yn = _layernorm(x1, g2, b2)                                       # f32
    gu = jnp.dot(yn.astype(jnp.bfloat16), wgu_ref[...],
                 preferred_element_type=jnp.float32) + bgu_ref[0]     # (T, 8E)
    gate = gu[:, :4 * E]                           # 512-lane aligned split (free)
    up = gu[:, 4 * E:]
    hidden = jax.nn.silu(gate) * up                # dropout = identity (eval)
    down = jnp.dot(hidden.astype(jnp.bfloat16), wd_ref[...],
                   preferred_element_type=jnp.float32) + bd

    o_ref[0] = (x1 + down).astype(o_ref.dtype)


def pack_block_weights(p):
    """One-time packing of the 15 module params into 6 resident kernel arrays.

    Call this ONCE at init time (not per forward) -- it does all the
    transposes / concats / bf16 casts so the forward wrapper launches no
    extra XLA ops.
    """
    E, H, HS = N_EMBD, N_HEAD, HEAD_SIZE
    bf16, f32 = jnp.bfloat16, jnp.float32

    def heads_to_cols(w):                 # (H, E, HS) -> (E, H*HS), head-blocked columns
        return jnp.transpose(w, (1, 0, 2)).reshape(E, H * HS)

    # NOTE: reference scales scores by C**-0.5 with C = n_embd (not head_size).
    scale = jnp.float32(E) ** -0.5
    wqkv = jnp.concatenate([heads_to_cols(p["wq"]) * scale,
                            heads_to_cols(p["wk"]),
                            heads_to_cols(p["wv"])], axis=1).astype(bf16)   # (E, 3E)
    wp = p["wp"].astype(bf16)                                               # (E, E)
    wgu = jnp.concatenate([p["wg"], p["wu"]], axis=1).astype(bf16)          # (E, 8E)
    wd = p["wd"].astype(bf16)                                               # (4E, E)
    vecs = jnp.concatenate([p["g1"], p["b1"], p["g2"], p["b2"],
                            p["bp"], p["bd"]], axis=0).astype(f32)          # (6, E)
    bgu = jnp.concatenate([p["bg"], p["bu"]], axis=1).astype(f32)           # (1, 8E)
    return (wqkv, wp, wgu, wd, vecs, bgu)


def transformer_block(x, weights):
    """Forward pass. `weights` is the tuple returned by pack_block_weights."""
    B, T, E = x.shape
    # full-array blocks, constant block index -> weights stay resident in VMEM
    w_specs = [pl.BlockSpec(w.shape, lambda b: (0, 0)) for w in weights]

    return pl.pallas_call(
        block_kernel,
        out_shape=jax.ShapeDtypeStruct((B, T, E), x.dtype),
        grid_spec=pltpu.PrefetchScalarGridSpec(
            num_scalar_prefetch=0,
            grid=(B,),
            in_specs=[pl.BlockSpec((1, T, E), lambda b: (b, 0, 0))] + w_specs,
            out_specs=pl.BlockSpec((1, T, E), lambda b: (b, 0, 0)),
        ),
        compiler_params=pltpu.CompilerParams(dimension_semantics=("parallel",)),
    )(x, *weights)


def init_params(key):
    ks = jax.random.split(key, 9)
    s = 0.02
    E, H, hs = N_EMBD, N_HEAD, HEAD_SIZE
    return {
        # per-head K/Q/V projection weights, stored as (H, E, hs) so q_h = x @ wq[h]
        "wq": s * jax.random.normal(ks[0], (H, E, hs), jnp.float32),
        "wk": s * jax.random.normal(ks[1], (H, E, hs), jnp.float32),
        "wv": s * jax.random.normal(ks[2], (H, E, hs), jnp.float32),
        "wp": s * jax.random.normal(ks[3], (E, E), jnp.float32),
        "bp": s * jax.random.normal(ks[4], (1, E), jnp.float32),
        "g1": jnp.ones((1, E), jnp.float32),
        "b1": jnp.zeros((1, E), jnp.float32),
        "g2": jnp.ones((1, E), jnp.float32),
        "b2": jnp.zeros((1, E), jnp.float32),
        "wg": s * jax.random.normal(ks[5], (E, 4 * E), jnp.float32),
        "bg": s * jax.random.normal(ks[6], (1, 4 * E), jnp.float32),
        "wu": s * jax.random.normal(ks[7], (E, 4 * E), jnp.float32),
        "bu": jnp.zeros((1, 4 * E), jnp.float32),
        "wd": s * jax.random.normal(ks[8], (4 * E, E), jnp.float32),
        "bd": jnp.zeros((1, E), jnp.float32),
    }


def reference_block(x, p):
    """Pure-JAX f32 reference matching the PyTorch forward (eval mode)."""
    def ln(v, g, b):
        mu = v.mean(-1, keepdims=True)
        var = ((v - mu) ** 2).mean(-1, keepdims=True)
        return (v - mu) / jnp.sqrt(var + LN_EPS) * g + b

    B, T, E = x.shape
    xn = ln(x, p["g1"][0], p["b1"][0])
    scale = E ** (-0.5)
    mask = jnp.tril(jnp.ones((T, T), bool))
    outs = []
    for h in range(N_HEAD):
        q = xn @ p["wq"][h]
        k = xn @ p["wk"][h]
        v = xn @ p["wv"][h]
        wei = jnp.einsum("btd,bsd->bts", q, k) * scale
        wei = jnp.where(mask, wei, -jnp.inf)
        wei = jax.nn.softmax(wei, axis=-1)
        outs.append(jnp.einsum("bts,bsd->btd", wei, v))
    att = jnp.concatenate(outs, axis=-1) @ p["wp"] + p["bp"][0]
    x1 = x + att
    yn = ln(x1, p["g2"][0], p["b2"][0])
    hid = jax.nn.silu(yn @ p["wg"] + p["bg"][0]) * (yn @ p["wu"] + p["bu"][0])
    return x1 + hid @ p["wd"] + p["bd"][0]


if __name__ == "__main__":
    key = jax.random.PRNGKey(0)
    k_x, k_p = jax.random.split(key)
    B, T = 2, 8                       # small seq length (<= block_size = 128)
    x = jax.random.normal(k_x, (B, T, N_EMBD), jnp.float32)
    params = init_params(k_p)

    # weight packing happens exactly once, outside the forward path
    packed = jax.block_until_ready(pack_block_weights(params))

    out = jax.block_until_ready(transformer_block(x, packed))
    ref = jax.block_until_ready(reference_block(x, params))

    assert out.shape == (B, T, N_EMBD)
    assert jnp.max(jnp.abs(out - ref)) < 1e-2, "mismatch vs pure-JAX reference"
    print("KERNEL_OK")
</pallas_src>

<mosaic_0001>
module attributes {stable_mosaic.version = 11 : i64} {
  func.func @block_kernel(%arg0: i32, %arg1: memref<1x8x128xf32, #tpu.memory_space<vmem>>, %arg2: memref<128x384xbf16, #tpu.memory_space<vmem>>, %arg3: memref<128x128xbf16, #tpu.memory_space<vmem>>, %arg4: memref<128x1024xbf16, #tpu.memory_space<vmem>>, %arg5: memref<512x128xbf16, #tpu.memory_space<vmem>>, %arg6: memref<6x128xf32, #tpu.memory_space<vmem>>, %arg7: memref<1x1024xf32, #tpu.memory_space<vmem>>, %arg8: memref<1x8x128xf32, #tpu.memory_space<vmem>>) attributes {dimension_semantics = [#tpu.dimension_semantics<parallel>], iteration_bounds = array<i64: 2>, scalar_prefetch = 0 : i64, scratch_operands = 0 : i64, tpu.core_type = #tpu.core_type<tc>, window_params = [{transform_indices = @transform_0, window_bounds = array<i64: 1, 8, 128>}, {pipeline_mode = #tpu.pipeline_mode<synchronous>, transform_indices = @transform_1, window_bounds = array<i64: 128, 384>}, {pipeline_mode = #tpu.pipeline_mode<synchronous>, transform_indices = @transform_2, window_bounds = array<i64: 128, 128>}, {pipeline_mode = #tpu.pipeline_mode<synchronous>, transform_indices = @transform_3, window_bounds = array<i64: 128, 1024>}, {pipeline_mode = #tpu.pipeline_mode<synchronous>, transform_indices = @transform_4, window_bounds = array<i64: 512, 128>}, {pipeline_mode = #tpu.pipeline_mode<synchronous>, transform_indices = @transform_5, window_bounds = array<i64: 6, 128>}, {pipeline_mode = #tpu.pipeline_mode<synchronous>, transform_indices = @transform_6, window_bounds = array<i64: 1, 1024>}, {transform_indices = @transform_7, window_bounds = array<i64: 1, 8, 128>}]} {
    %c0 = arith.constant 0 : index
    %c0_0 = arith.constant 0 : index
    %c0_1 = arith.constant 0 : index
    %0 = vector.load %arg1[%c0, %c0_0, %c0_1] : memref<1x8x128xf32, #tpu.memory_space<vmem>>, vector<1x8x128xf32>
    %1 = vector.shape_cast %0 : vector<1x8x128xf32> to vector<8x128xf32>
    %c0_2 = arith.constant 0 : index
    %c0_3 = arith.constant 0 : index
    %2 = vector.load %arg6[%c0_2, %c0_3] : memref<6x128xf32, #tpu.memory_space<vmem>>, vector<1x128xf32>
    %3 = vector.shape_cast %2 : vector<1x128xf32> to vector<128xf32>
    %c1 = arith.constant 1 : index
    %c0_4 = arith.constant 0 : index
    %4 = vector.load %arg6[%c1, %c0_4] : memref<6x128xf32, #tpu.memory_space<vmem>>, vector<1x128xf32>
    %5 = vector.shape_cast %4 : vector<1x128xf32> to vector<128xf32>
    %c2 = arith.constant 2 : index
    %c0_5 = arith.constant 0 : index
    %6 = vector.load %arg6[%c2, %c0_5] : memref<6x128xf32, #tpu.memory_space<vmem>>, vector<1x128xf32>
    %7 = vector.shape_cast %6 : vector<1x128xf32> to vector<128xf32>
    %c3 = arith.constant 3 : index
    %c0_6 = arith.constant 0 : index
    %8 = vector.load %arg6[%c3, %c0_6] : memref<6x128xf32, #tpu.memory_space<vmem>>, vector<1x128xf32>
    %9 = vector.shape_cast %8 : vector<1x128xf32> to vector<128xf32>
    %c4 = arith.constant 4 : index
    %c0_7 = arith.constant 0 : index
    %10 = vector.load %arg6[%c4, %c0_7] : memref<6x128xf32, #tpu.memory_space<vmem>>, vector<1x128xf32>
    %11 = vector.shape_cast %10 : vector<1x128xf32> to vector<128xf32>
    %c5 = arith.constant 5 : index
    %c0_8 = arith.constant 0 : index
    %12 = vector.load %arg6[%c5, %c0_8] : memref<6x128xf32, #tpu.memory_space<vmem>>, vector<1x128xf32>
    %13 = vector.shape_cast %12 : vector<1x128xf32> to vector<128xf32>
    %cst = arith.constant dense<0.000000e+00> : vector<8xf32>
    %14 = vector.multi_reduction <add>, %1, %cst [1] : vector<8x128xf32> to vector<8xf32>
    %15 = vector.shape_cast %14 : vector<8xf32> to vector<8x1xf32>
    %cst_9 = arith.constant 1.280000e+02 : f32
    %16 = vector.broadcast %cst_9 : f32 to vector<8x1xf32>
    %17 = arith.divf %15, %16 : vector<8x1xf32>
    %18 = vector.broadcast %17 : vector<8x1xf32> to vector<8x128xf32>
    %19 = arith.subf %1, %18 : vector<8x128xf32>
    %20 = arith.mulf %19, %19 : vector<8x128xf32>
    %cst_10 = arith.constant dense<0.000000e+00> : vector<8xf32>
    %21 = vector.multi_reduction <add>, %20, %cst_10 [1] : vector<8x128xf32> to vector<8xf32>
    %22 = vector.shape_cast %21 : vector<8xf32> to vector<8x1xf32>
    %cst_11 = arith.constant 1.280000e+02 : f32
    %23 = vector.broadcast %cst_11 : f32 to vector<8x1xf32>
    %24 = arith.divf %22, %23 : vector<8x1xf32>
    %25 = vector.broadcast %17 : vector<8x1xf32> to vector<8x128xf32>
    %26 = arith.subf %1, %25 : vector<8x128xf32>
    %cst_12 = arith.constant 9.99999974E-6 : f32
    %27 = vector.broadcast %cst_12 : f32 to vector<8x1xf32>
    %28 = arith.addf %24, %27 : vector<8x1xf32>
    %29 = math.rsqrt %28 : vector<8x1xf32>
    %30 = vector.broadcast %29 : vector<8x1xf32> to vector<8x128xf32>
    %31 = arith.mulf %26, %30 : vector<8x128xf32>
    %32 = vector.shape_cast %3 : vector<128xf32> to vector<1x128xf32>
    %33 = vector.broadcast %32 : vector<1x128xf32> to vector<8x128xf32>
    %34 = arith.mulf %31, %33 : vector<8x128xf32>
    %35 = vector.shape_cast %5 : vector<128xf32> to vector<1x128xf32>
    %36 = vector.broadcast %35 : vector<1x128xf32> to vector<8x128xf32>
    %37 = arith.addf %34, %36 : vector<8x128xf32>
    %38 = arith.truncf %37 : vector<8x128xf32> to vector<8x128xbf16>
    %c0_13 = arith.constant 0 : index
    %c0_14 = arith.constant 0 : index
    %39 = vector.load %arg2[%c0_13, %c0_14] : memref<128x384xbf16, #tpu.memory_space<vmem>>, vector<128x384xbf16>
    %cst_15 = arith.constant dense<0.000000e+00> : vector<8x384xf32>
    %40 = tpu.matmul %38, %39, %cst_15 {dimension_numbers = #tpu.dot_dimension_numbers<[1], [0], [0], [1], [0, 0, 1, 1], [], []>} : vector<8x128xbf16>, vector<128x384xbf16>, vector<8x384xf32> -> vector<8x384xf32>
    %41 = arith.truncf %40 : vector<8x384xf32> to vector<8x384xbf16>
    %42 = vector.extract_strided_slice %41 {offsets = [0, 0], sizes = [8, 128], strides = [1, 1]} : vector<8x384xbf16> to vector<8x128xbf16>
    %43 = vector.shape_cast %42 : vector<8x128xbf16> to vector<8x8x16xbf16>
    %44 = tpu.transpose %43, [1, 0, 2] : vector<8x8x16xbf16> -> vector<8x8x16xbf16>
    %45 = vector.extract_strided_slice %41 {offsets = [0, 128], sizes = [8, 128], strides = [1, 1]} : vector<8x384xbf16> to vector<8x128xbf16>
    %46 = vector.shape_cast %45 : vector<8x128xbf16> to vector<8x8x16xbf16>
    %47 = tpu.transpose %46, [1, 0, 2] : vector<8x8x16xbf16> -> vector<8x8x16xbf16>
    %48 = vector.extract_strided_slice %41 {offsets = [0, 256], sizes = [8, 128], strides = [1, 1]} : vector<8x384xbf16> to vector<8x128xbf16>
    %49 = vector.shape_cast %48 : vector<8x128xbf16> to vector<8x8x16xbf16>
    %50 = tpu.transpose %49, [1, 0, 2] : vector<8x8x16xbf16> -> vector<8x8x16xbf16>
    %51 = tpu.iota {dimensions = array<i32: 0>} : vector<8x8xi32>
    %52 = tpu.iota {dimensions = array<i32: 1>} : vector<8x8xi32>
    %53 = arith.cmpi sge, %51, %52 : vector<8x8xi32>
    %cst_16 = arith.constant 0.000000e+00 : f32
    %cst_17 = arith.constant -1.000000e+30 : f32
    %54 = vector.broadcast %cst_16 : f32 to vector<8x8xf32>
    %55 = vector.broadcast %cst_17 : f32 to vector<8x8xf32>
    %56 = arith.select %53, %54, %55 : vector<8x8xi1>, vector<8x8xf32>
    "tpu.trace_start"() <{level = 10 : i32, message = "hqd,hkd->hqk"}> : () -> ()
    %cst_18 = arith.constant dense<0.000000e+00> : vector<8x8x8xf32>
    %57 = tpu.matmul %44, %47, %cst_18 {dimension_numbers = #tpu.dot_dimension_numbers<[2], [2], [1], [1], [0, 0, 0, 1, 1, 1], [0], [0]>} : vector<8x8x16xbf16>, vector<8x8x16xbf16>, vector<8x8x8xf32> -> vector<8x8x8xf32>
    "tpu.trace_stop"() : () -> ()
    %58 = vector.shape_cast %56 : vector<8x8xf32> to vector<1x8x8xf32>
    %59 = vector.broadcast %58 : vector<1x8x8xf32> to vector<8x8x8xf32>
    %60 = arith.addf %57, %59 : vector<8x8x8xf32>
    %cst_19 = arith.constant dense<0xFF800000> : vector<8x8xf32>
    %61 = vector.multi_reduction <maximumf>, %60, %cst_19 [2] : vector<8x8x8xf32> to vector<8x8xf32>
    %62 = vector.shape_cast %61 : vector<8x8xf32> to vector<8x8x1xf32>
    %63 = vector.broadcast %62 : vector<8x8x1xf32> to vector<8x8x8xf32>
    %64 = arith.subf %60, %63 : vector<8x8x8xf32>
    %65 = math.exp %64 : vector<8x8x8xf32>
    %cst_20 = arith.constant dense<0.000000e+00> : vector<8x8xf32>
    %66 = vector.multi_reduction <add>, %65, %cst_20 [2] : vector<8x8x8xf32> to vector<8x8xf32>
    %67 = vector.shape_cast %66 : vector<8x8xf32> to vector<8x8x1xf32>
    %68 = tpu.reciprocal %67 {approx = true} : vector<8x8x1xf32> -> vector<8x8x1xf32>
    %69 = vector.broadcast %68 : vector<8x8x1xf32> to vector<8x8x8xf32>
    %70 = arith.mulf %65, %69 : vector<8x8x8xf32>
    %71 = arith.truncf %70 : vector<8x8x8xf32> to vector<8x8x8xbf16>
    "tpu.trace_start"() <{level = 10 : i32, message = "hqk,hkd->hqd"}> : () -> ()
    %cst_21 = arith.constant dense<0.000000e+00> : vector<8x8x16xf32>
    %72 = tpu.matmul %71, %50, %cst_21 {dimension_numbers = #tpu.dot_dimension_numbers<[2], [1], [1], [2], [0, 0, 0, 1, 1, 2], [0], [0]>} : vector<8x8x8xbf16>, vector<8x8x16xbf16>, vector<8x8x16xf32> -> vector<8x8x16xf32>
    "tpu.trace_stop"() : () -> ()
    %73 = tpu.transpose %72, [1, 0, 2] : vector<8x8x16xf32> -> vector<8x8x16xf32>
    %74 = vector.shape_cast %73 : vector<8x8x16xf32> to vector<8x128xf32>
    %75 = arith.truncf %74 : vector<8x128xf32> to vector<8x128xbf16>
    %c0_22 = arith.constant 0 : index
    %c0_23 = arith.constant 0 : index
    %76 = vector.load %arg3[%c0_22, %c0_23] : memref<128x128xbf16, #tpu.memory_space<vmem>>, vector<128x128xbf16>
    %cst_24 = arith.constant dense<0.000000e+00> : vector<8x128xf32>
    %77 = tpu.matmul %75, %76, %cst_24 {dimension_numbers = #tpu.dot_dimension_numbers<[1], [0], [0], [1], [0, 0, 1, 1], [], []>} : vector<8x128xbf16>, vector<128x128xbf16>, vector<8x128xf32> -> vector<8x128xf32>
    %78 = vector.shape_cast %11 : vector<128xf32> to vector<1x128xf32>
    %79 = vector.broadcast %78 : vector<1x128xf32> to vector<8x128xf32>
    %80 = arith.addf %77, %79 : vector<8x128xf32>
    %81 = arith.addf %1, %80 : vector<8x128xf32>
    %cst_25 = arith.constant dense<0.000000e+00> : vector<8xf32>
    %82 = vector.multi_reduction <add>, %81, %cst_25 [1] : vector<8x128xf32> to vector<8xf32>
    %83 = vector.shape_cast %82 : vector<8xf32> to vector<8x1xf32>
    %cst_26 = arith.constant 1.280000e+02 : f32
    %84 = vector.broadcast %cst_26 : f32 to vector<8x1xf32>
    %85 = arith.divf %83, %84 : vector<8x1xf32>
    %86 = vector.broadcast %85 : vector<8x1xf32> to vector<8x128xf32>
    %87 = arith.subf %81, %86 : vector<8x128xf32>
    %88 = arith.mulf %87, %87 : vector<8x128xf32>
    %cst_27 = arith.constant dense<0.000000e+00> : vector<8xf32>
    %89 = vector.multi_reduction <add>, %88, %cst_27 [1] : vector<8x128xf32> to vector<8xf32>
    %90 = vector.shape_cast %89 : vector<8xf32> to vector<8x1xf32>
    %cst_28 = arith.constant 1.280000e+02 : f32
    %91 = vector.broadcast %cst_28 : f32 to vector<8x1xf32>
    %92 = arith.divf %90, %91 : vector<8x1xf32>
    %93 = vector.broadcast %85 : vector<8x1xf32> to vector<8x128xf32>
    %94 = arith.subf %81, %93 : vector<8x128xf32>
    %cst_29 = arith.constant 9.99999974E-6 : f32
    %95 = vector.broadcast %cst_29 : f32 to vector<8x1xf32>
    %96 = arith.addf %92, %95 : vector<8x1xf32>
    %97 = math.rsqrt %96 : vector<8x1xf32>
    %98 = vector.broadcast %97 : vector<8x1xf32> to vector<8x128xf32>
    %99 = arith.mulf %94, %98 : vector<8x128xf32>
    %100 = vector.shape_cast %7 : vector<128xf32> to vector<1x128xf32>
    %101 = vector.broadcast %100 : vector<1x128xf32> to vector<8x128xf32>
    %102 = arith.mulf %99, %101 : vector<8x128xf32>
    %103 = vector.shape_cast %9 : vector<128xf32> to vector<1x128xf32>
    %104 = vector.broadcast %103 : vector<1x128xf32> to vector<8x128xf32>
    %105 = arith.addf %102, %104 : vector<8x128xf32>
    %106 = arith.truncf %105 : vector<8x128xf32> to vector<8x128xbf16>
    %c0_30 = arith.constant 0 : index
    %c0_31 = arith.constant 0 : index
    %107 = vector.load %arg4[%c0_30, %c0_31] : memref<128x1024xbf16, #tpu.memory_space<vmem>>, vector<128x1024xbf16>
    %cst_32 = arith.constant dense<0.000000e+00> : vector<8x1024xf32>
    %108 = tpu.matmul %106, %107, %cst_32 {dimension_numbers = #tpu.dot_dimension_numbers<[1], [0], [0], [1], [0, 0, 1, 1], [], []>} : vector<8x128xbf16>, vector<128x1024xbf16>, vector<8x1024xf32> -> vector<8x1024xf32>
    %c0_33 = arith.constant 0 : index
    %c0_34 = arith.constant 0 : index
    %109 = vector.load %arg7[%c0_33, %c0_34] : memref<1x1024xf32, #tpu.memory_space<vmem>>, vector<1x1024xf32>
    %110 = vector.shape_cast %109 : vector<1x1024xf32> to vector<1024xf32>
    %111 = vector.shape_cast %110 : vector<1024xf32> to vector<1x1024xf32>
    %112 = vector.broadcast %111 : vector<1x1024xf32> to vector<8x1024xf32>
    %113 = arith.addf %108, %112 : vector<8x1024xf32>
    %114 = vector.extract_strided_slice %113 {offsets = [0, 0], sizes = [8, 512], strides = [1, 1]} : vector<8x1024xf32> to vector<8x512xf32>
    %115 = vector.extract_strided_slice %113 {offsets = [0, 512], sizes = [8, 512], strides = [1, 1]} : vector<8x1024xf32> to vector<8x512xf32>
    %116 = arith.negf %114 : vector<8x512xf32>
    %117 = math.exp %116 : vector<8x512xf32>
    %cst_35 = arith.constant 1.000000e+00 : f32
    %118 = vector.broadcast %cst_35 : f32 to vector<8x512xf32>
    %119 = arith.addf %118, %117 : vector<8x512xf32>
    %120 = arith.divf %118, %119 : vector<8x512xf32>
    %121 = arith.mulf %114, %120 : vector<8x512xf32>
    %122 = arith.mulf %121, %115 : vector<8x512xf32>
    %123 = arith.truncf %122 : vector<8x512xf32> to vector<8x512xbf16>
    %c0_36 = arith.constant 0 : index
    %c0_37 = arith.constant 0 : index
    %124 = vector.load %arg5[%c0_36, %c0_37] : memref<512x128xbf16, #tpu.memory_space<vmem>>, vector<512x128xbf16>
    %cst_38 = arith.constant dense<0.000000e+00> : vector<8x128xf32>
    %125 = tpu.matmul %123, %124, %cst_38 {dimension_numbers = #tpu.dot_dimension_numbers<[1], [0], [0], [1], [0, 0, 1, 1], [], []>} : vector<8x512xbf16>, vector<512x128xbf16>, vector<8x128xf32> -> vector<8x128xf32>
    %126 = vector.shape_cast %13 : vector<128xf32> to vector<1x128xf32>
    %127 = vector.broadcast %126 : vector<1x128xf32> to vector<8x128xf32>
    %128 = arith.addf %125, %127 : vector<8x128xf32>
    %129 = arith.addf %81, %128 : vector<8x128xf32>
    %c0_39 = arith.constant 0 : index
    %c0_40 = arith.constant 0 : index
    %c0_41 = arith.constant 0 : index
    %130 = vector.load %arg8[%c0_39, %c0_40, %c0_41] : memref<1x8x128xf32, #tpu.memory_space<vmem>>, vector<1x8x128xf32>
    %131 = vector.shape_cast %130 : vector<1x8x128xf32> to vector<8x128xf32>
    %132 = vector.shape_cast %129 : vector<8x128xf32> to vector<1x8x128xf32>
    tpu.vector_store %arg8[%c0_39, %c0_40, %c0_41], %132 {strides = array<i32>} : memref<1x8x128xf32, #tpu.memory_space<vmem>>, vector<1x8x128xf32>,
    return
  }
  func.func @transform_0(%arg0: i32) -> (i32, i32, i32) {
    %c0_i32 = arith.constant 0 : i32
    %c0_i32_0 = arith.constant 0 : i32
    %c0_i32_1 = arith.constant 0 : i32
    return %arg0, %c0_i32, %c0_i32_0 : i32, i32, i32
  }
  func.func @transform_1(%arg0: i32) -> (i32, i32) {
    %c0_i32 = arith.constant 0 : i32
    %c0_i32_0 = arith.constant 0 : i32
    %c0_i32_1 = arith.constant 0 : i32
    return %c0_i32, %c0_i32_0 : i32, i32
  }
  func.func @transform_2(%arg0: i32) -> (i32, i32) {
    %c0_i32 = arith.constant 0 : i32
    %c0_i32_0 = arith.constant 0 : i32
    %c0_i32_1 = arith.constant 0 : i32
    return %c0_i32, %c0_i32_0 : i32, i32
  }
  func.func @transform_3(%arg0: i32) -> (i32, i32) {
    %c0_i32 = arith.constant 0 : i32
    %c0_i32_0 = arith.constant 0 : i32
    %c0_i32_1 = arith.constant 0 : i32
    return %c0_i32, %c0_i32_0 : i32, i32
  }
  func.func @transform_4(%arg0: i32) -> (i32, i32) {
    %c0_i32 = arith.constant 0 : i32
    %c0_i32_0 = arith.constant 0 : i32
    %c0_i32_1 = arith.constant 0 : i32
    return %c0_i32, %c0_i32_0 : i32, i32
  }
  func.func @transform_5(%arg0: i32) -> (i32, i32) {
    %c0_i32 = arith.constant 0 : i32
    %c0_i32_0 = arith.constant 0 : i32
    %c0_i32_1 = arith.constant 0 : i32
    return %c0_i32, %c0_i32_0 : i32, i32
  }
  func.func @transform_6(%arg0: i32) -> (i32, i32) {
    %c0_i32 = arith.constant 0 : i32
    %c0_i32_0 = arith.constant 0 : i32
    %c0_i32_1 = arith.constant 0 : i32
    return %c0_i32, %c0_i32_0 : i32, i32
  }
  func.func @transform_7(%arg0: i32) -> (i32, i32, i32) {
    %c0_i32 = arith.constant 0 : i32
    %c0_i32_0 = arith.constant 0 : i32
    %c0_i32_1 = arith.constant 0 : i32
    return %arg0, %c0_i32, %c0_i32_0 : i32, i32, i32
  }
}

</mosaic_0001>

<bundles_post_ra>
// kernel: tpu_custom_call.1
= control target key start
LH: loop header
LB: loop body
LE: loop exit
PB: predicated region body
PF: predicated region fallthrough
CT: control target
= control target key end

     0   :  { %s5267_s0 = inlined_call_operand.hbm [shape: f32[2,8,128], index: 0, kind: input, shape index: {}]   ;;  %s5268_s1 = inlined_call_operand.hbm [shape: bf16[128,384], index: 1, kind: input, shape index: {}]   ;;  %s5269_s2 = inlined_call_operand.hbm [shape: bf16[128,128], index: 2, kind: input, shape index: {}]   ;;  %s5270_s3 = inlined_call_operand.hbm [shape: bf16[128,1024], index: 3, kind: input, shape index: {}]   ;;  %s5271_s4 = inlined_call_operand.hbm [shape: bf16[512,128], index: 4, kind: input, shape index: {}]   ;;  %s5272_s5 = inlined_call_operand.vmem [shape: f32[6,128], index: 5, kind: input, shape index: {}]   ;;  %s5273_s6 = inlined_call_operand.hbm [shape: f32[1,1024], index: 6, kind: input, shape index: {}]   ;;  %s5274_s7 = inlined_call_operand.hbm [shape: f32[2,8,128], index: 7, kind: output, shape index: {}]  }
   0x1   :  { %5279 = sst [smem:[#allocation19_spill]] %s5268_s1 }
   0x2   :  { %5280 = sst [smem:[#allocation20_spill]] %s5269_s2 }
   0x3   :  { %12 = vsyncpa [#allocation3], 0 }
   0x4   :  { %14 = vsyncpa [#allocation3 + $0x1], 0 }
   0x5   :  { %15 = vsyncpa [#allocation6], 0 }
   0x6   :  { %16 = vsyncpa [#allocation9], 0 }
   0x7   :  { %17 = vsyncpa [#allocation12], 0 }
   0x8   :  { %18 = vsyncpa [#allocation4], 0 }
   0x9   :  { %20 = vsyncpa [#allocation4 + $0x1], 0  ;;  %s4625_s24 = smov 0   ;;  %s4627_s25 = smov 0  }
   0xa   :  { %s4629_s26 = smov 0   ;;  %s4631_s27 = smov 0  }
   0xb LB: > { %s4559_s28 = smov [#allocation5]   ;;  %s4646_s30 = sadd.s32 4294967295, %s4557_s27   ;;  %s4557_s27 = sphi %s4631_s27, %s5305_s27   ;;  %s4553_s26 = sphi %s4629_s26, %s5304_s26   ;;  %s4549_s25 = sphi %s4627_s25, %s5303_s25   ;;  %s4545_s24 = sphi %s4625_s24, %s5302_s24  }
   0xc   : > { %s221_s29 = sshll.u32 %s4559_s28, 4  ;;  %p3669_p0 = scmp.ge.s32.totalorder %s4557_s27, 1  ;;  %s222_s29 = int_to_ptr.vmem [resolvable:$true] %s221_s29 }
   0xd   : > { %p5275_p1 = scmp.eq.s32.totalorder %s4646_s30, 0  ;;  %p209_p2 = scmp.lt.s32.totalorder %s4557_s27, 3 }
   0xe   : > { %s4560_s9 = smov [#allocation8]   ;;  %s4561_s12 = smov [#allocation7]  }
   0xf   : > { %p4651_p3 = pnand %p3669_p0, %p209_p2  ;;  %s247_s10 = sshll.u32 %s4560_s9, 4  ;;  %s4664_s10 = int_to_ptr.vmem [resolvable:$true] %s247_s10 }
  0x10   : > { %s4666_s13 = sshll.u32 %s4561_s12, 4  ;;  %s4334_s15 = scalar_lea.vmem %s222_s29, 3072  ;;  %s235_s13 = int_to_ptr.vmem [resolvable:$true] %s4666_s13 }
  0x11   : > { %s5281_s8 = scalar_select %p4651_p3, 1, 0 }
  0x12   : > { %p4106_p5 = pneg %p4651_p3  ;;  %p4335_p8 = scmp.ne.s32.totalorder %s222_s29, %s4334_s15 }
  0x13   : > { %p4342_p11 = scmp.lt.s32.totalorder %s222_s29, %s222_s29  ;;  %p4343_p12 = scmp.lt.s32.totalorder %s4334_s15, %s4334_s15 }
  0x14   : > { %p4660_p6 = pnand %p4106_p5, %p5275_p1 }
  0x15   : > { %p4344_p13 = por %p4343_p12, %p4342_p11 }
  0x16   : > { %p4670_p7 = pneg %p4660_p6 }
  0x18   : > { %p4337_p9 = pnand %p4335_p8, %p4670_p7 }
  0x1a   : > { %p4338_p10 = pneg %p4337_p9 }
  0x1c   : > { %p4345_p0 = pnand %p4344_p13, %p4338_p10 }
  0x1e   : > { %4348 = shalt.err (!%p4345_p0)
}
  0x1f   : > { %s4562_s16 = smov 192   ;;  %s4563_s17 = smov 12  }
  0x20   : > { %s5284_s1 = sld [smem:[#allocation19_spill]]  ;;  %s4360_s20 = scalar_lea.vmem %s4664_s10, 8192 }
  0x21   : > { %p4361_p2 = scmp.ne.s32.totalorder %s4664_s10, %s4360_s20  ;;  %p4368_p9 = scmp.lt.s32.totalorder %s4664_s10, %s4664_s10 }
  0x22   : > { %p4369_p10 = scmp.lt.s32.totalorder %s4360_s20, %s4360_s20 }
  0x23   : > { %p4363_p5 = pnand %p4361_p2, %p4670_p7 }
  0x24   : > { %p4370_p11 = por %p4369_p10, %p4368_p9 }
  0x25   : > { %p4364_p8 = pneg %p4363_p5 }
  0x26   : > { %4109 = dma.hbm_to_vmem [thread:$0]  (!%p4660_p6), %s5284_s1, 3072, %s222_s29, [#allocation6], %s4562_s16, %s4562_s16, %s4563_s17  }
  0x27   : > { %p4371_p12 = pnand %p4370_p11, %p4364_p8 }
  0x29   : > { %4374 = shalt.err (!%p4371_p12)
}
  0x2a   : > { %s4564_s21 = smov 512   ;;  %s4565_s22 = smov 32  }
  0x2b   : > { %4115 = dma.hbm_to_vmem [thread:$0]  (!%p4660_p6), %s5270_s3, 8192, %s4664_s10, [#allocation9], %s4564_s21, %s4564_s21, %s4565_s22  }
  0x2c   : > { %s4386_s29 = scalar_lea.vmem %s235_s13, 1024  ;;  %p4394_p5 = scmp.lt.s32.totalorder %s235_s13, %s235_s13 }
  0x2d   : > { %p4387_p13 = scmp.ne.s32.totalorder %s235_s13, %s4386_s29  ;;  %p4395_p8 = scmp.lt.s32.totalorder %s4386_s29, %s4386_s29 }
  0x2f   : > { %p4389_p0 = pnand %p4387_p13, %p4670_p7  ;;  %p4396_p9 = por %p4395_p8, %p4394_p5 }
  0x31   : > { %p4390_p2 = pneg %p4389_p0 }
  0x33   : > { %p4397_p10 = pnand %p4396_p9, %p4390_p2 }
  0x35   : > { %4400 = shalt.err (!%p4397_p10)
}
  0x36   : > { %s4566_s9 = smov 64   ;;  %s4567_s12 = smov 4  }
  0x37   : > { %s5285_s2 = sld [smem:[#allocation20_spill]]  ;;  %s4568_s10 = smov [#allocation10]  }
  0x38   : > { %s260_s17 = sshll.u32 %s4568_s10, 4  ;;  %s4569_s18 = smov [#allocation11]   ;;  %s261_s17 = int_to_ptr.vmem [resolvable:$true] %s260_s17 }
  0x39   : > { %s277_s19 = sshll.u32 %s4569_s18, 4  ;;  %s4412_s20 = scalar_lea.vmem %s261_s17, 4096  ;;  %s278_s19 = int_to_ptr.vmem [resolvable:$true] %s277_s19 }
  0x3a   : > { %p4413_p11 = scmp.ne.s32.totalorder %s261_s17, %s4412_s20  ;;  %p4420_p0 = scmp.lt.s32.totalorder %s261_s17, %s261_s17 }
  0x3b   : > { %p4421_p2 = scmp.lt.s32.totalorder %s4412_s20, %s4412_s20 }
  0x3c   : > { %p4415_p12 = pnand %p4413_p11, %p4670_p7 }
  0x3d   : > { %4112 = dma.hbm_to_vmem [thread:$0]  (!%p4660_p6), %s5285_s2, 1024, %s235_s13, [#allocation6], %s4566_s9, %s4566_s9, %s4567_s12  }
  0x3e   : > { %p4416_p13 = pneg %p4415_p12  ;;  %p4422_p5 = por %p4421_p2, %p4420_p0 }
  0x40   : > { %p4423_p8 = pnand %p4422_p5, %p4416_p13 }
  0x42   : > { %4426 = shalt.err (!%p4423_p8)
}
  0x43   : > { %4118 = dma.hbm_to_vmem [thread:$0]  (!%p4660_p6), %s5271_s4, 4096, %s261_s17, [#allocation9], %s4566_s9, %s4566_s9, %s4567_s12  }
  0x44   : > { %s4438_s13 = scalar_lea.vmem %s278_s19, 128  ;;  %p4446_p11 = scmp.lt.s32.totalorder %s278_s19, %s278_s19 }
  0x45   : > { %p4439_p9 = scmp.ne.s32.totalorder %s278_s19, %s4438_s13  ;;  %p4447_p12 = scmp.lt.s32.totalorder %s4438_s13, %s4438_s13 }
  0x47   : > { %p4441_p10 = pnand %p4439_p9, %p4670_p7  ;;  %p4448_p1 = por %p4447_p12, %p4446_p11 }
  0x49   : > { %p4442_p4 = pneg %p4441_p10 }
  0x4b   : > { %p4449_p3 = pnand %p4448_p1, %p4442_p4 }
  0x4d   : > { %4452 = shalt.err (!%p4449_p3)
}
  0x4e   : > { %4121 = dma.hbm_to_vmem [thread:$0]  (!%p4660_p6), %s5273_s6, 128, %s278_s19, [#allocation12]  }
  0x4f   : > { %s3668_s14 = sadd.s32 4294967294, %s4557_s27   ;;  %s4717_s11 = sadd.s32 1, %s4557_s27  }
  0x50   : > { %s33_s29 = sadd.s32 1, %s4553_s26  ;;  %s30_s9 = ssub.s32 %s4557_s27, %s4717_s11 }
  0x51   : > { %p40_p1 = scmp.ne.s32.totalorder %s4553_s26, %s4549_s25  ;;  %p31_p3 = scmp.eq.s32.totalorder %s30_s9, 0 }
  0x52   : > { %p41_p4 = scmp.eq.s32.totalorder %s4557_s27, 0  ;;  %p46_p7 = scmp.ne.s32.totalorder %s4549_s25, %s4545_s24 }
  0x53   : > { %p196_p13 = scmp.eq.s32.totalorder %s4646_s30, 1  ;;  %p5286_p2 = scmp.eq.s32.totalorder %s4646_s30, 0 }
  0x54   : > { %s4729_s12 = scalar_select %p31_p3, %s4553_s26, %s33_s29  }
  0x55   : > { %p42_p0 = por %p41_p4, %p40_p1  ;;  %p4733_p5 = por %p5286_p2, %p46_p7 }
  0x56   : > { %p4737_p6 = por %p196_p13, %p40_p1  ;;  %p202_p8 = scmp.eq.s32.totalorder %s3668_s14, 1 }
  0x57   : > { %s5287_s15 = scalar_select %p4733_p5, 1, 0 }
  0x58   : > { %s5288_s16 = scalar_select %p4737_p6, 1, 0 }
  0x59   : > { %p4135_p9 = scmp.lt.s32.totalorder %s4557_s27, 2  ;;  %s288_s10 = sand.u32 1, %s4553_s26  }
  0x5a   : > { %p4743_p10 = por %p202_p8, %p46_p7  ;;  %s3676_s18 = sshll.u32 %s288_s10, 3 }
  0x5b   : > { %s3677_s19 = sshll.u32 %s4557_s27, 7  ;;  %s292_s13 = scalar_lea.vmem [#allocation2], %s3676_s18 }
  0x5c   : > { %s5289_s17 = scalar_select %p4743_p10, 1, 0 }
  0x5d   : > { %s4751_s22 = scalar_lea.hbm %s5267_s0, %s3677_s19  ;;  %s299_s23 = sshll.u32 %s292_s13, 4  ;;  %s300_s23 = int_to_ptr.vmem [resolvable:$true] %s299_s23 }
  0x5e   : > { %p4753_p11 = pnand %p4135_p9, %p42_p0  ;;  %s289_s14 = scalar_lea.sflag [#allocation3], %s288_s10 }
  0x5f   : > { %s4453_s29 = scalar_lea.hbm %s4751_s22, 128  ;;  %s4458_s20 = scalar_lea.hbm %s5267_s0, 256 }
  0x60   : > { %p4454_p12 = scmp.ne.s32.totalorder %s4751_s22, %s4453_s29  ;;  %p4455_p1 = pneg %p4753_p11 }
  0x61   : > { %p4459_p7 = scmp.lt.s32.totalorder %s4751_s22, %s5267_s0  ;;  %p4460_p13 = scmp.lt.s32.totalorder %s4458_s20, %s4453_s29 }
  0x62   : > { %p4456_p3 = pnand %p4455_p1, %p4454_p12 }
  0x63   : > { %p4461_p0 = por %p4460_p13, %p4459_p7 }
  0x64   : > { %p4457_p4 = pneg %p4456_p3 }
  0x66   : > { %p4462_p2 = pnand %p4461_p0, %p4457_p4 }
  0x68   : > { %4465 = shalt.err (!%p4462_p2)
}
  0x69   : > { %s4466_s13 = scalar_lea.vmem %s300_s23, 128  ;;  %s4570_s10 = smov [#allocation2]  }
  0x6a   : > { %p4467_p8 = scmp.ne.s32.totalorder %s300_s23, %s4466_s13  ;;  %s4471_s1 = sshll.u32 %s4570_s10, 4  ;;  %s4472_s1 = int_to_ptr.vmem [resolvable:$false] %s4471_s1 }
  0x6b   : > { %s4473_s2 = scalar_lea.vmem %s4472_s1, 256  ;;  %p4474_p12 = scmp.lt.s32.totalorder %s300_s23, %s4472_s1 }
  0x6c   : > { %p4469_p9 = pnand %p4467_p8, %p4455_p1  ;;  %p4475_p3 = scmp.lt.s32.totalorder %s4473_s2, %s4466_s13 }
  0x6e   : > { %p4470_p10 = pneg %p4469_p9  ;;  %p4476_p6 = por %p4475_p3, %p4474_p12 }
  0x70   : > { %p4477_p5 = pnand %p4476_p6, %p4470_p10 }
  0x72   : > { %4480 = shalt.err (!%p4477_p5)
}
  0x73   : > { %4125 = dma.hbm_to_vmem [thread:$0]  (!%p4753_p11), %s4751_s22, 128, %s300_s23, %s289_s14  }
  0x74   : > { %p5291_p4 = scmp.ne.s32.totalorder %s5281_s8, 0 }
  0x75   : > { %s4774_s29 = sand.u32 (!%p5291_p4), 1, %s4549_s25   ;;  %p5292_p5 = scmp.ne.s32.totalorder (!%p5291_p4), %s5287_s15, 0 }
  0x76   : > { %308 = sbr.rel (%p5291_p4) target bundleno = 2655 (0xa5f), region = 48  ;;  %s3679_s9 = sshll.u32 (!%p5291_p4), %s4774_s29, 3 }
  0x77   : > { %s311_s1 = scalar_lea.sflag (!%p5291_p4), [#allocation3], %s4774_s29  ;;  %s4780_s2 = scalar_lea.vmem (!%p5291_p4), [#allocation2], %s3679_s9 }
  0x7b   : > { %4524 = dma.done.wait (%p5292_p5), %s311_s1, 128  }
  0x7c   : > { %4526 = vsyncadd (%p5292_p5), %s311_s1, 4294967168  ;;  %p5293_p6 = scmp.eq.s32.totalorder %s4646_s30, 0 }
  0x7e   : > { %4528 = dma.done.wait (%p5293_p6), [#allocation6], 4096   ;;  %p5294_p10 = pmov %p5293_p6 }
  0x7f   : > { %p5295_p11 = pmov %p5293_p6 }
  0x80   : > { %4530 = vsyncadd (%p5294_p10), [#allocation6], 4294963200 }
  0x81   : > { %4532 = dma.done.wait (%p5295_p11), [#allocation9], 12288   ;;  %p5296_p1 = pmov %p5293_p6 }
  0x83   : > { %4534 = vsyncadd (%p5296_p1), [#allocation9], 4294955008  ;;  %p5297_p7 = pmov %p5296_p1 }
  0x84   : > { %p5298_p13 = pmov %p5296_p1 }
  0x85   : > { %4536 = dma.done.wait (%p5297_p7), [#allocation12], 128  }
  0x86   : > { %4538 = vsyncadd (%p5298_p13), [#allocation12], 4294967168  ;;  %v366_v0 = vld [vmem:[%s4780_s2] sm:$0xff]  ;;  %v4571_v3 = vmov 0.0   ;;  %v4209_v14 = vld [vmem:[#allocation5 + $0x80] ss:$12 sps:$4 sm:$0xff]   ;;  %v666_v60 = vlaneseq }
  0x87   : > { %373 = vadd.xlane.f32.xlu0 %v366_v0  ;;  %v4198_v1 = vld [vmem:[#allocation5 + $0xac] ss:$12 sps:$4 sm:$0xff]   ;;  %v4200_v2 = vld [vmem:[#allocation5 + $0xa8] ss:$12 sps:$4 sm:$0xff]   ;;  %3946 = vmatprep.subr.bf16.mxu1 %v4571_v3  ;;  %v4201_v4 = vld [vmem:[#allocation5 + $0xb0] ss:$12 sps:$4 sm:$0xff]  }
  0x88   : > { %v4202_v5 = vld [vmem:[#allocation5 + $0x94] ss:$12 sps:$4 sm:$0xff]   ;;  %v4204_v6 = vld [vmem:[#allocation5 + $0x90] ss:$12 sps:$4 sm:$0xff]   ;;  %556 = vmatprep.subr.bf16.mxu0 %v4198_v1  ;;  %v4205_v7 = vld [vmem:[#allocation5 + $0x98] ss:$12 sps:$4 sm:$0xff]   ;;  %3947 = vmatpush3.bf16.msra.mxu1 %v4201_v4 }
  0x89   : > { %557 = vmatpush1.bf16.msra.mxu0 %v4200_v2  ;;  %3948 = vmatprep.subr.bf16.mxu1 %v4571_v3  ;;  %v4206_v12 = vld [vmem:[#allocation5 + $0x7c] ss:$12 sps:$4 sm:$0xff]   ;;  %v4208_v13 = vld [vmem:[#allocation5 + $0x78] ss:$12 sps:$4 sm:$0xff]   ;;  %v4212_v16 = vld [vmem:[#allocation5 + $0x60] ss:$12 sps:$4 sm:$0xff]  }
  0x8a   : > { %558 = vmatprep.subr.bf16.mxu0 %v4202_v5  ;;  %v4210_v15 = vld [vmem:[#allocation5 + $0x64] ss:$12 sps:$4 sm:$0xff]   ;;  %v4213_v17 = vld [vmem:[#allocation5 + $0x68] ss:$12 sps:$4 sm:$0xff]   ;;  %v4214_v18 = vld [vmem:[#allocation5 + $0x4c] ss:$12 sps:$4 sm:$0xff]  }
  0x8b   : > { %v4216_v19 = vld [vmem:[#allocation5 + $0x48] ss:$12 sps:$4 sm:$0xff]   ;;  %v4217_v20 = vld [vmem:[#allocation5 + $0x50] ss:$12 sps:$4 sm:$0xff]   ;;  %v4572_v22 = vmov 0   ;;  %vm4573_vm0 = vmmov 0  }
  0x8c   : > { %3949 = vmatpush3.bf16.msra.mxu1 %v4205_v7  ;;  %v4218_v21 = vld [vmem:[#allocation5 + $0x34] ss:$12 sps:$4 sm:$0xff]   ;;  %588 = vmatprep.mubr.bf16.mxu0 %v4572_v22  ;;  %v4220_v23 = vld [vmem:[#allocation5 + $0x30] ss:$12 sps:$4 sm:$0xff]   ;;  %v4221_v24 = vld [vmem:[#allocation5 + $0x38] ss:$12 sps:$4 sm:$0xff]  }
  0x8d   : > { %559 = vmatpush1.bf16.msra.mxu0 %v4204_v6  ;;  %3950 = vmatprep.subr.bf16.mxu1 %v4571_v3  ;;  %v4222_v25 = vld [vmem:[#allocation5 + $0x1c] ss:$12 sps:$4 sm:$0xff]   ;;  %v4224_v26 = vld [vmem:[#allocation5 + $0x18] ss:$12 sps:$4 sm:$0xff]   ;;  %v4225_v27 = vld [vmem:[#allocation5 + $0x20] ss:$12 sps:$4 sm:$0xff]  }
  0x8e   : > { %560 = vmatprep.subr.bf16.mxu0 %v4206_v12  ;;  %3962 = vmatprep.mubr.msk.bf16.mxu1 %vm4573_vm0, %v4571_v3  ;;  %v4226_v28 = vld [vmem:[#allocation5 + $0x4] ss:$12 sps:$4 sm:$0xff]   ;;  %v4228_v29 = vld [vmem:[#allocation5] ss:$12 sps:$4 sm:$0xff]   ;;  %v4229_v30 = vld [vmem:[#allocation5 + $0x8] ss:$12 sps:$4 sm:$0xff]  }
  0x8f   : > { %v3686_v35 = vld [vmem:[%s5272_s5] ss:$0 sm:$0xff]  ;;  %v3687_v37 = vld [vmem:[%s5272_s5 + $0x1] ss:$0 sm:$0xff]  ;;  %s4574_s28 = smov 80   ;;  %s4575_s14 = smov 112  }
  0x90   : > { %3951 = vmatpush3.bf16.msra.mxu1 %v4209_v14  ;;  %s4576_s19 = smov 96   ;;  %s4577_s20 = smov 48   ;;  %v4581_v58 = vmov 1983009808   ;;  %v4582_v1 = vmov 1934713408  }
  0x91   : > { %561 = vmatpush1.bf16.msra.mxu0 %v4208_v13  ;;  %3952 = vmatprep.subr.bf16.mxu1 %v4571_v3  ;;  %s4578_s21 = smov 16   ;;  %s4579_s18 = smov 64   ;;  %v664_v59 = vunpack.c.l.s4 %v4581_v58  ;;  %v681_v2 = vunpack.c.l.s4 %v4582_v1  ;;  %vm1288_vm1 = vcmask 130048   ;;  %vm1657_vm3 = vcmask 64512  }
  0x92   : > { %562 = vmatprep.subr.bf16.mxu0 %v4210_v15  ;;  %s4580_s13 = smov 32   ;;  %vm1757_vm4 = vcmask 1043456   ;;  %vm2424_vm5 = vcmask 261120   ;;  %vm2426_vm6 = vcmask 392192   ;;  %vm2428_vm7 = vcmask 523264   ;;  %s3537_s10 = scalar_lea.sflag [#allocation4], %s4774_s29 }
  0x93   : > { %v665_v63 = vunpack.c.0.s8 %v664_v59  ;;  %vm2430_vm8 = vcmask 654336   ;;  %vm2432_vm9 = vcmask 785408   ;;  %vm2434_vm10 = vcmask 916480   ;;  %p5299_p2 = scmp.ne.s32.totalorder %s5288_s16, 0 }
  0x94   : > { %3953 = vmatpush3.bf16.msra.mxu1 %v4213_v17 }
  0x95   : > { %563 = vmatpush1.bf16.msra.mxu0 %v4212_v16  ;;  %3954 = vmatprep.subr.bf16.mxu1 %v4571_v3 }
  0x96   : > { %564 = vmatprep.subr.bf16.mxu0 %v4214_v18 }
  0x98   : > { %3955 = vmatpush3.bf16.msra.mxu1 %v4217_v20 }
  0x99   : > { %565 = vmatpush1.bf16.msra.mxu0 %v4216_v19  ;;  %3956 = vmatprep.subr.bf16.mxu1 %v4571_v3 }
  0x9a   : > { %566 = vmatprep.subr.bf16.mxu0 %v4218_v21 }
  0x9c   : > { %3957 = vmatpush3.bf16.msra.mxu1 %v4221_v24 }
  0x9d   : > { %567 = vmatpush1.bf16.msra.mxu0 %v4220_v23  ;;  %3958 = vmatprep.subr.bf16.mxu1 %v4571_v3 }
  0x9e   : > { %568 = vmatprep.subr.bf16.mxu0 %v4222_v25 }
  0xa0   : > { %3959 = vmatpush3.bf16.msra.mxu1 %v4225_v27 }
  0xa1   : > { %569 = vmatpush1.bf16.msra.mxu0 %v4224_v26  ;;  %3960 = vmatprep.subr.bf16.mxu1 %v4571_v3 }
  0xa2   : > { %570 = vmatprep.subr.bf16.mxu0 %v4226_v28 }
  0xa4   : > { %3961 = vmatpush3.bf16.msra.mxu1 %v4229_v30 }
  0xa5   : > { %571 = vmatpush1.bf16.msra.mxu0 %v4228_v29  ;;  %3966 = vmatprep.subr.bf16.mxu1 %v4571_v3 }
  0xa6   : > { %3990 = vmatprep.subr.bf16.mxu0 %v4571_v3 }
 0x110   : > { %v374_v8 = vpop.xlane.xlu0 %373 }
 0x111   : > { %v376_v9 = vmul.f32 0.0078125, %v374_v8  ;;  %v682_v8 = vunpack.c.0.s8 %v681_v2 }
 0x113   : > { %v377_v10 = vsub.f32 %v366_v0, %v376_v9  ;;  %v4850_v0 = vshrl.u32 %v666_v60, 7 }
 0x115   : > { %v378_v11 = vmul.f32 %v377_v10, %v377_v10  ;;  %v4853_v6 = vsub.s32 %v665_v63, %v4850_v0  ;;  %v4858_v14 = vsub.s32 %v682_v8, %v4850_v0 }
 0x117   : > { %379 = vadd.xlane.f32.xlu0 %v378_v11 }
 0x1a0   : > { %v380_v31 = vpop.xlane.xlu0 %379 }
 0x1a1   : > { %v381_v32 = vmul.f32 0.0078125, %v380_v31 }
 0x1a3   : > { %v382_v33 = vadd.f32 1e-05, %v381_v32 }
 0x1a5   : > { %4270 = vrsqrt.f32 %v382_v33 }
 0x1b2   : > { %v4271_v34 = vpop.eup %4270 }
 0x1b3   : > { %v384_v36 = vmul.f32 %v4271_v34, %v377_v10 }
 0x1b5   : > { %v389_v38 = vmul.f32 %v3686_v35, %v384_v36 }
 0x1b7   : > { %v394_v39 = vadd.f32 %v3687_v37, %v389_v38 }
 0x1b9   : > { %v395_v40 = vpack.c.bf16 %v394_v39, %v394_v39 }
 0x1bb   : > { %589 = vmatmul.mubr.bf16.vlgmr.msra.gmra.mxu0 %v395_v40  ;;  %3963 = vmatmul.mubr.bf16.vlgmr.msra.gmra.mxu1 %v395_v40 }
 0x1bc   : > { %3968 = vmatprep.mubr.msk.bf16.mxu1 %vm4573_vm0, %v4571_v3  ;;  %3992 = vmatprep.mubr.msk.bf16.mxu0 %vm4573_vm0, %v4571_v3 }
 0x27b   : > { %v590_v41 = vpop.f32.mrf.mxu0  ;;  %v4822_v42 = vpop.f32.mrf.mxu1 }
 0x27c   : > { %v4824_v43 = vpack.c.bf16 %v590_v41, %v590_v41 }
 0x27d   : > { %v592_v44 = vpop.f32.mrf.mxu0  ;;  %v3964_v45 = vpop.f32.mrf.mxu1 }
 0x27e   : > { %647 = vrot.lane.b32.xlu0 %v4824_v43, %s4574_s28  ;;  %641 = vrot.lane.b32.xlu1 %v4824_v43, %s4575_s14  ;;  %v638_v48 = vpack.c.bf16 %v592_v44, %v592_v44 }
 0x27f   : > { %v594_v46 = vpop.f32.mrf.mxu0  ;;  %v634_v47 = vpop.f32.mrf.mxu1 }
 0x281   : > { %v595_v49 = vpop.f32.mrf.mxu0  ;;  %v3965_v50 = vpop.f32.mrf.mxu1 }
 0x282   : > { %644 = vrot.lane.b32.xlu1 %v4824_v43, %s4576_s19  ;;  %861 = vrot.lane.b32.xlu0 %v638_v48, %s4574_s28 }
 0x286   : > { %653 = vrot.lane.b32.xlu0 %v4824_v43, %s4577_s20  ;;  %855 = vrot.lane.b32.xlu1 %v638_v48, %s4575_s14 }
 0x28a   : > { %659 = vrot.lane.b32.xlu0 %v4824_v43, %s4578_s21  ;;  %858 = vrot.lane.b32.xlu1 %v638_v48, %s4576_s19 }
 0x28e   : > { %864 = vrot.lane.b32.xlu1 %v638_v48, %s4579_s18 }
 0x292   : > { %867 = vrot.lane.b32.xlu1 %v638_v48, %s4577_s20 }
 0x296   : > { %870 = vrot.lane.b32.xlu1 %v638_v48, %s4580_s13 }
 0x29a   : > { %873 = vrot.lane.b32.xlu1 %v638_v48, %s4578_s21 }
 0x29e   : > { %650 = vrot.lane.b32.xlu1 %v4824_v43, %s4579_s18 }
 0x2a2   : > { %656 = vrot.lane.b32.xlu1 %v4824_v43, %s4580_s13 }
 0x2f0   : > { %v648_v51 = vpop.permute.xlu0 %647  ;;  %v642_v52 = vpop.permute.xlu1 %641 }
 0x2f4   : > { %v4847_v53 = vpop.permute.xlu1 %644  ;;  %v862_v54 = vpop.permute.xlu0 %861 }
 0x2f8   : > { %v856_v55 = vpop.permute.xlu1 %855  ;;  %v654_v56 = vpop.permute.xlu0 %653 }
 0x2f9   : > { %v696_v7 = vcombine.low %v642_v52, %v654_v56 }
 0x2fb   : > { %v703_v12 = vrot.slane %v696_v7, %v4853_v6 }
 0x2fc   : > { %v859_v57 = vpop.permute.xlu1 %858  ;;  %v660_v61 = vpop.permute.xlu0 %659 }
 0x2fd   : > { %v704_v4 = vcombine.low %v648_v51, %v660_v61 }
 0x2ff   : > { %v711_v9 = vrot.slane %v704_v4, %v4853_v6 }
 0x300   : > { %v865_v62 = vpop.permute.xlu1 %864 }
 0x301   : > { %v876_v10 = vcombine.low %v638_v48, %v865_v62  ;;  %v712_v15 = vcombine.low %v703_v12, %v711_v9  ;;  %v713_v18 = vcombine.high %v703_v12, %v711_v9 }
 0x303   : > { %v883_v16 = vrot.slane %v876_v10, %v4853_v6  ;;  %v4863_v25 = vrot.slane %v712_v15, %v4858_v14  ;;  %v4869_v29 = vrot.slane %v713_v18, %v4858_v14 }
 0x304   : > { %v868_v5 = vpop.permute.xlu1 %867 }
 0x305   : > { %v910_v19 = vcombine.low %v856_v55, %v868_v5  ;;  %v728_v36 = vcombine.high %v4863_v25, %v4572_v22  ;;  %v729_v38 = vcombine.high %v4869_v29, %v4572_v22  ;;  %v735_v2 = vshrl.u32 %v4863_v25, 16 }
 0x306   : > { %v751_v4 = vshrl.u32 %v4869_v29, 16 }
 0x307   : > { %v917_v30 = vrot.slane %v910_v19, %v4853_v6  ;;  %v743_v12 = vshrl.u32 %v728_v36, 16 }
 0x308   : > { %v871_v11 = vpop.permute.xlu1 %870 }
 0x309   : > { %v884_v13 = vcombine.low %v859_v57, %v871_v11 }
 0x30b   : > { %v891_v17 = vrot.slane %v884_v13, %v4853_v6  ;;  %v759_v13 = vshrl.u32 %v729_v38, 16 }
 0x30c   : > { %v874_v20 = vpop.permute.xlu1 %873 }
 0x30d   : > { %v892_v21 = vcombine.low %v883_v16, %v891_v17  ;;  %v893_v23 = vcombine.high %v883_v16, %v891_v17  ;;  %v918_v24 = vcombine.low %v862_v54, %v874_v20 }
 0x30f   : > { %v900_v26 = vrot.slane %v892_v21, %v4858_v14  ;;  %v907_v27 = vrot.slane %v893_v23, %v4858_v14  ;;  %v925_v28 = vrot.slane %v918_v24, %v4853_v6 }
 0x310   : > { %v651_v31 = vpop.permute.xlu1 %650 }
 0x311   : > { %v908_v32 = vcombine.high %v900_v26, %v4572_v22  ;;  %v909_v33 = vcombine.high %v907_v27, %v4572_v22  ;;  %v926_v34 = vcombine.low %v917_v30, %v925_v28  ;;  %v927_v35 = vcombine.high %v917_v30, %v925_v28 }
 0x312   : > { %v662_v37 = vcombine.low %v4824_v43, %v651_v31  ;;  %v948_v39 = vshrl.u32 %v900_v26, 16  ;;  %v964_v46 = vshrl.u32 %v907_v27, 16 }
 0x313   : > { %v934_v40 = vrot.slane %v926_v34, %v4858_v14  ;;  %v941_v41 = vrot.slane %v927_v35, %v4858_v14  ;;  %v956_v45 = vshrl.u32 %v908_v32, 16  ;;  %v972_v47 = vshrl.u32 %v909_v33, 16 }
 0x314   : > { %v657_v44 = vpop.permute.xlu1 %656  ;;  %v669_v55 = vrot.slane %v662_v37, %v4853_v6 }
 0x315   : > { %v670_v48 = vcombine.low %v4847_v53, %v657_v44  ;;  %v942_v49 = vcombine.high %v934_v40, %v4572_v22  ;;  %v943_v50 = vcombine.high %v941_v41, %v4572_v22  ;;  %v946_v51 = vpack.i.b16 %v934_v40, %v900_v26 }
 0x316   : > { %v949_v43 = vshrl.u32 %v934_v40, 16  ;;  %v962_v52 = vpack.i.b16 %v941_v41, %v907_v27  ;;  %v965_v54 = vshrl.u32 %v941_v41, 16 }
 0x317   : > { %v677_v56 = vrot.slane %v670_v48, %v4853_v6  ;;  %v954_v58 = vpack.i.b16 %v942_v49, %v908_v32  ;;  %v957_v59 = vshrl.u32 %v942_v49, 16  ;;  %v970_v61 = vpack.i.b16 %v943_v50, %v909_v33 }
 0x318   : > { %v950_v57 = vpack.i.b16 %v949_v43, %v948_v39  ;;  %v966_v62 = vpack.i.b16 %v965_v54, %v964_v46  ;;  %v973_v63 = vshrl.u32 %v943_v50, 16  ;;  %v976_v1 = vcombine.low %v946_v51, %v962_v52 }
 0x319   : > { %v678_v53 = vcombine.low %v669_v55, %v677_v56  ;;  %v984_v5 = vcombine.low %v954_v58, %v970_v61  ;;  %v679_v7 = vcombine.high %v669_v55, %v677_v56  ;;  %v958_v8 = vpack.i.b16 %v957_v59, %v956_v45 }
 0x31a   : > { %v974_v9 = vpack.i.b16 %v973_v63, %v972_v47  ;;  %v1010_v10 = vcombine.low %v950_v57, %v966_v62  ;;  %v983_v20 = vrot.slane %v976_v1, %v4853_v6 }
 0x31b   : > { %v686_v11 = vrot.slane %v678_v53, %v4858_v14  ;;  %v693_v15 = vrot.slane %v679_v7, %v4858_v14  ;;  %v991_v16 = vrot.slane %v984_v5, %v4853_v6 }
 0x31c   : > { %v1017_v26 = vrot.slane %v1010_v10, %v4853_v6  ;;  %v1018_v31 = vcombine.low %v958_v8, %v974_v9 }
 0x31d   : > { %v694_v17 = vcombine.high %v686_v11, %v4572_v22  ;;  %v732_v18 = vpack.i.b16 %v4863_v25, %v686_v11  ;;  %v734_v19 = vshrl.u32 %v686_v11, 16  ;;  %v695_v21 = vcombine.high %v693_v15, %v4572_v22 }
 0x31e   : > { %v748_v23 = vpack.i.b16 %v4869_v29, %v693_v15  ;;  %v750_v24 = vshrl.u32 %v693_v15, 16  ;;  %v992_v35 = vcombine.low %v983_v20, %v991_v16  ;;  %v1025_v39 = vrot.slane %v1018_v31, %v4853_v6 }
 0x31f   : > { %v736_v27 = vpack.i.b16 %v735_v2, %v734_v19  ;;  %v740_v28 = vpack.i.b16 %v728_v36, %v694_v17  ;;  %v742_v30 = vshrl.u32 %v694_v17, 16  ;;  %v756_v33 = vpack.i.b16 %v729_v38, %v695_v21 }
 0x320   : > { %v752_v32 = vpack.i.b16 %v751_v4, %v750_v24  ;;  %v758_v34 = vshrl.u32 %v695_v21, 16  ;;  %v762_v25 = vcombine.low %v732_v18, %v748_v23  ;;  %v993_v40 = vcombine.high %v983_v20, %v991_v16 }
 0x321   : > { %v744_v37 = vpack.i.b16 %v743_v12, %v742_v30  ;;  %v770_v44 = vcombine.low %v740_v28, %v756_v33  ;;  %v1026_v29 = vcombine.low %v1017_v26, %v1025_v39  ;;  %v1027_v46 = vcombine.high %v1017_v26, %v1025_v39 }
 0x322   : > { %v760_v41 = vpack.i.b16 %v759_v13, %v758_v34  ;;  %v796_v45 = vcombine.low %v736_v27, %v752_v32  ;;  %v1000_v36 = vrot.slane %v992_v35, %v4858_v14  ;;  %v769_v49 = vrot.slane %v762_v25, %v4853_v6 }
 0x323   : > { %v777_v47 = vrot.slane %v770_v44, %v4853_v6  ;;  %v1034_v38 = vrot.slane %v1026_v29, %v4858_v14  ;;  %v4903_v50 = vrot.slane %v993_v40, %v4858_v14  ;;  %v4906_v51 = vrot.slane %v1027_v46, %v4858_v14 }
 0x324   : > { %v804_v48 = vcombine.low %v744_v37, %v760_v41  ;;  %v803_v43 = vrot.slane %v796_v45, %v4853_v6  ;;  %v1047_v7 = vshrl.u32 %v1000_v36, 16  ;;  %v1008_v19 = vcombine.high %v1000_v36, %v4572_v22 }
 0x325   : > { %v778_v54 = vcombine.low %v769_v49, %v777_v47  ;;  %v779_v55 = vcombine.high %v769_v49, %v777_v47  ;;  %v1046_v56 = vpack.i.b16 %v1034_v38, %v1000_v36  ;;  %v1058_v57 = vpack.i.b16 %v4906_v51, %v4903_v50 }
 0x326   : > { %v811_v52 = vrot.slane %v804_v48, %v4853_v6  ;;  %v1048_v63 = vshrl.u32 %v1034_v38, 16  ;;  %v4916_v1 = vcombine.high %v4906_v51, %v4572_v22  ;;  %v1009_v8 = vcombine.high %v4903_v50, %v4572_v22 }
 0x327   : > { %v1293_v61 = vsel %vm1288_vm1, %v1046_v56, 0  ;;  %v1477_v62 = vsel %vm1288_vm1, %v1058_v57, 0  ;;  %v786_v4 = vrot.slane %v778_v54, %v4858_v14  ;;  %v793_v5 = vrot.slane %v779_v55, %v4858_v14 }
 0x328   : > { %v812_v58 = vcombine.low %v803_v43, %v811_v52  ;;  %v813_v59 = vcombine.high %v803_v43, %v811_v52  ;;  %3967 = vmatpush3.bf16.xpose.msra.mxu1 %v1293_v61  ;;  %3991 = vmatpush3.bf16.xpose.msra.mxu0 %v1477_v62  ;;  %v1049_v11 = vpack.i.b16 %v1048_v63, %v1047_v7  ;;  %v1053_v31 = vshrl.u32 %v1008_v19, 16 }
 0x329   : > { %3972 = vmatprep.subr.bf16.mxu1 %v4571_v3  ;;  %4002 = vmatprep.subr.bf16.mxu0 %v4571_v3  ;;  %v1064_v12 = vpack.i.b16 %v4916_v1, %v1009_v8  ;;  %v1042_v16 = vcombine.high %v1034_v38, %v4572_v22  ;;  %v833_v20 = vshrl.u32 %v786_v4, 16  ;;  %v795_v21 = vcombine.high %v793_v5, %v4572_v22 }
 0x32a   : > { %v820_v53 = vrot.slane %v812_v58, %v4858_v14  ;;  %v4920_v2 = vrot.slane %v813_v59, %v4858_v14  ;;  %v1339_v13 = vsel %vm1288_vm1, %v1049_v11, 0  ;;  %v794_v32 = vcombine.high %v786_v4, %v4572_v22 }
 0x32b   : > { %v1569_v15 = vsel %vm1288_vm1, %v1064_v12, 0  ;;  %v1052_v23 = vpack.i.b16 %v1042_v16, %v1008_v19  ;;  %v1054_v28 = vshrl.u32 %v1042_v16, 16  ;;  %v1060_v37 = vshrl.u32 %v4906_v51, 16 }
 0x32c   : > { %v832_v9 = vpack.i.b16 %v820_v53, %v786_v4  ;;  %v844_v10 = vpack.i.b16 %v4920_v2, %v793_v5  ;;  %v834_v17 = vshrl.u32 %v820_v53, 16  ;;  %v829_v18 = vcombine.high %v4920_v2, %v4572_v22 }
 0x32d   : > { %v1385_v27 = vsel %vm1288_vm1, %v1052_v23, 0  ;;  %v828_v30 = vcombine.high %v820_v53, %v4572_v22  ;;  %v1055_v33 = vpack.i.b16 %v1054_v28, %v1053_v31  ;;  %v1059_v39 = vshrl.u32 %v4903_v50, 16 }
 0x32e   : > { %v835_v24 = vpack.i.b16 %v834_v17, %v833_v20  ;;  %v850_v26 = vpack.i.b16 %v829_v18, %v795_v21  ;;  %v839_v40 = vshrl.u32 %v794_v32, 16  ;;  %v1066_v29 = vshrl.u32 %v4916_v1, 16 }
 0x32f   : > { %3969 = vmatmul.mubr.msk.bf16.vlgmr.msra.gmra.mxu1 %vm1288_vm1, %v832_v9  ;;  %3993 = vmatmul.mubr.msk.bf16.vlgmr.msra.gmra.mxu0 %vm1288_vm1, %v844_v10  ;;  %v838_v34 = vpack.i.b16 %v828_v30, %v794_v32  ;;  %v1431_v35 = vsel %vm1288_vm1, %v1055_v33, 0  ;;  %v840_v25 = vshrl.u32 %v828_v30, 16  ;;  %v1061_v41 = vpack.i.b16 %v1060_v37, %v1059_v39 }
 0x330   : > { %3973 = vmatpush3.bf16.xpose.msra.mxu1 %v1339_v13  ;;  %4003 = vmatpush3.bf16.xpose.msra.mxu0 %v1569_v15  ;;  %v846_v46 = vshrl.u32 %v4920_v2, 16  ;;  %v1065_v47 = vshrl.u32 %v1009_v8, 16  ;;  %v845_v48 = vshrl.u32 %v793_v5, 16  ;;  %v852_v50 = vshrl.u32 %v829_v18, 16 }
 0x331   : > { %3974 = vmatprep.mubr.msk.bf16.mxu1 %vm4573_vm0, %v4571_v3  ;;  %4004 = vmatprep.mubr.msk.bf16.mxu0 %vm4573_vm0, %v4571_v3  ;;  %v841_v44 = vpack.i.b16 %v840_v25, %v839_v40  ;;  %v1523_v45 = vsel %vm1288_vm1, %v1061_v41, 0  ;;  %v851_v51 = vshrl.u32 %v795_v21, 16  ;;  %v1285_v52 = vand.u32 127, %v666_v60 }
 0x332   : > { %3978 = vmatprep.subr.bf16.mxu1 %v4571_v3  ;;  %4014 = vmatprep.subr.bf16.mxu0 %v4571_v3  ;;  %v1067_v36 = vpack.i.b16 %v1066_v29, %v1065_v47  ;;  %v847_v49 = vpack.i.b16 %v846_v46, %v845_v48  ;;  %v4583_v54 = vmov -1e+30   ;;  %v4992_v48 = vpack.c.bf16 %v4822_v42, %v4822_v42 }
 0x333   : > { %v853_v43 = vpack.i.b16 %v852_v50, %v851_v51  ;;  %vm1286_vm2 = vcmp.ge.s32.totalorder %v4850_v0, %v1285_v52 }
 0x334   : > { %v1615_v38 = vsel %vm1288_vm1, %v1067_v36, 0  ;;  %v1287_v55 = vsel %vm1286_vm2, 0.0, %v4583_v54 }
 0x337   : > { %3975 = vmatmul.mubr.msk.bf16.vlgmr.msra.gmra.mxu1 %vm1288_vm1, %v835_v24  ;;  %4005 = vmatmul.mubr.msk.bf16.vlgmr.msra.gmra.mxu0 %vm1288_vm1, %v850_v26 }
 0x338   : > { %3979 = vmatpush3.bf16.xpose.msra.mxu1 %v1385_v27  ;;  %3980 = vmatprep.mubr.msk.bf16.mxu1 %vm4573_vm0, %v4571_v3 }
 0x339   : > { %3984 = vmatprep.subr.bf16.mxu1 %v4571_v3  ;;  %4016 = vmatprep.mubr.msk.bf16.mxu0 %vm4573_vm0, %v4571_v3 }
 0x33f   : > { %3981 = vmatmul.mubr.msk.bf16.vlgmr.msra.gmra.mxu1 %vm1288_vm1, %v838_v34 }
 0x340   : > { %3985 = vmatpush3.bf16.xpose.msra.mxu1 %v1431_v35  ;;  %3986 = vmatprep.mubr.msk.bf16.mxu1 %vm4573_vm0, %v4571_v3 }
 0x341   : > { %3996 = vmatprep.subr.bf16.mxu1 %v4571_v3 }
 0x347   : > { %3987 = vmatmul.mubr.msk.bf16.vlgmr.msra.gmra.mxu1 %vm1288_vm1, %v841_v44 }
 0x348   : > { %3997 = vmatpush3.bf16.xpose.msra.mxu1 %v1523_v45  ;;  %3998 = vmatprep.mubr.msk.bf16.mxu1 %vm4573_vm0, %v4571_v3 }
 0x349   : > { %4008 = vmatprep.subr.bf16.mxu1 %v4571_v3 }
 0x34f   : > { %3999 = vmatmul.mubr.msk.bf16.vlgmr.msra.gmra.mxu1 %vm1288_vm1, %v847_v49 }
 0x350   : > { %4009 = vmatpush3.bf16.xpose.msra.mxu1 %v1615_v38  ;;  %4010 = vmatprep.mubr.msk.bf16.mxu1 %vm4573_vm0, %v4571_v3 }
 0x351   : > { %4020 = vmatprep.subr.bf16.mxu1 %v4571_v3 }
 0x357   : > { %4011 = vmatmul.mubr.msk.bf16.vlgmr.msra.gmra.mxu1 %vm1288_vm1, %v853_v43 }
 0x358   : > { %4022 = vmatprep.mubr.msk.bf16.mxu1 %vm4573_vm0, %v4571_v3 }
 0x3ef   : > { %v1329_v56 = vpop.f32.mrf.mxu1  ;;  %v1513_v57 = vpop.f32.mrf.mxu0 }
 0x3f0   : > { %v4979_v58 = vadd.f32 %v1329_v56, %v1287_v55  ;;  %v1514_v18 = vadd.f32 %v1513_v57, %v1287_v55 }
 0x3f1   : > { %v3970_v59 = vpop.f32.mrf.mxu1  ;;  %v3994_v61 = vpop.f32.mrf.mxu0 }
 0x3f2   : > { %v1658_v62 = vsel %vm1657_vm3, %v4979_v58, -inf  ;;  %v1670_v24 = vsel %vm1657_vm3, %v1514_v18, -inf }
 0x3f3   : > { %1659 = vmax.xlane.f32.xlu1 %v1658_v62  ;;  %v1332_v63 = vpop.f32.mrf.mxu1  ;;  %v1516_v1 = vpop.f32.mrf.mxu0 }
 0x3f5   : > { %v3971_v53 = vpop.f32.mrf.mxu1  ;;  %v3995_v2 = vpop.f32.mrf.mxu0 }
 0x3f7   : > { %v1375_v60 = vpop.f32.mrf.mxu1  ;;  %v1605_v4 = vpop.f32.mrf.mxu0 }
 0x3f8   : > { %v1376_v5 = vadd.f32 %v1375_v60, %v1287_v55  ;;  %v1606_v23 = vadd.f32 %v1605_v4, %v1287_v55 }
 0x3f9   : > { %v3976_v7 = vpop.f32.mrf.mxu1  ;;  %v4006_v8 = vpop.f32.mrf.mxu0 }
 0x3fa   : > { %v1661_v9 = vsel %vm1657_vm3, %v1376_v5, -inf  ;;  %v1676_v31 = vsel %vm1657_vm3, %v1606_v23, -inf }
 0x3fb   : > { %1662 = vmax.xlane.f32.xlu0 %v1661_v9  ;;  %v1378_v10 = vpop.f32.mrf.mxu1  ;;  %v1608_v11 = vpop.f32.mrf.mxu0 }
 0x3fd   : > { %v3977_v12 = vpop.f32.mrf.mxu1  ;;  %v4007_v13 = vpop.f32.mrf.mxu0 }
 0x3ff   : > { %v1421_v15 = vpop.f32.mrf.mxu1 }
 0x400   : > { %v1422_v16 = vadd.f32 %v1421_v15, %v1287_v55 }
 0x401   : > { %v3982_v17 = vpop.f32.mrf.mxu1 }
 0x402   : > { %v1664_v19 = vsel %vm1657_vm3, %v1422_v16, -inf }
 0x403   : > { %1665 = vmax.xlane.f32.xlu0 %v1664_v19  ;;  %v1424_v20 = vpop.f32.mrf.mxu1 }
 0x405   : > { %v3983_v21 = vpop.f32.mrf.mxu1 }
 0x407   : > { %v1467_v26 = vpop.f32.mrf.mxu1  ;;  %1671 = vmax.xlane.f32.xlu0 %v1670_v24 }
 0x408   : > { %v1468_v27 = vadd.f32 %v1467_v26, %v1287_v55 }
 0x409   : > { %v3988_v28 = vpop.f32.mrf.mxu1 }
 0x40a   : > { %v1667_v30 = vsel %vm1657_vm3, %v1468_v27, -inf }
 0x40b   : > { %1668 = vmax.xlane.f32.xlu1 %v1667_v30  ;;  %v1470_v32 = vpop.f32.mrf.mxu1  ;;  %1677 = vmax.xlane.f32.xlu0 %v1676_v31 }
 0x40d   : > { %v3989_v33 = vpop.f32.mrf.mxu1 }
 0x40f   : > { %v1559_v34 = vpop.f32.mrf.mxu1 }
 0x410   : > { %v1560_v35 = vadd.f32 %v1559_v34, %v1287_v55 }
 0x411   : > { %v4000_v37 = vpop.f32.mrf.mxu1 }
 0x412   : > { %v1673_v25 = vsel %vm1657_vm3, %v1560_v35, -inf }
 0x413   : > { %1674 = vmax.xlane.f32.xlu1 %v1673_v25  ;;  %v1562_v39 = vpop.f32.mrf.mxu1 }
 0x415   : > { %v4001_v40 = vpop.f32.mrf.mxu1 }
 0x417   : > { %v1651_v41 = vpop.f32.mrf.mxu1 }
 0x418   : > { %v1652_v44 = vadd.f32 %v1651_v41, %v1287_v55 }
 0x419   : > { %v4012_v45 = vpop.f32.mrf.mxu1 }
 0x41a   : > { %v1679_v29 = vsel %vm1657_vm3, %v1652_v44, -inf }
 0x41b   : > { %1680 = vmax.xlane.f32.xlu1 %v1679_v29  ;;  %v1654_v46 = vpop.f32.mrf.mxu1 }
 0x41d   : > { %v4013_v47 = vpop.f32.mrf.mxu1 }
 0x421   : > { %1069 = vrot.lane.b32.xlu0 %v4992_v48, %s4575_s14 }
 0x425   : > { %1078 = vrot.lane.b32.xlu0 %v4992_v48, %s4579_s18 }
 0x429   : > { %1084 = vrot.lane.b32.xlu0 %v4992_v48, %s4580_s13 }
 0x42c   : > { %1072 = vrot.lane.b32.xlu1 %v4992_v48, %s4576_s19 }
 0x430   : > { %1075 = vrot.lane.b32.xlu1 %v4992_v48, %s4574_s28 }
 0x434   : > { %1081 = vrot.lane.b32.xlu1 %v4992_v48, %s4577_s20 }
 0x438   : > { %1087 = vrot.lane.b32.xlu1 %v4992_v48, %s4578_s21 }
 0x47c   : > { %v1660_v42 = vpop.xlane.xlu1 %1659 }
 0x47d   : > { %v1682_v36 = vsub.f32 %v4979_v58, %v1660_v42 }
 0x47f   : > { %v1690_v49 = vmul.f32 1.442695, %v1682_v36 }
 0x481   : > { %4272 = vpow2.f32 %v1690_v49 }
 0x484   : > { %v1663_v38 = vpop.xlane.xlu0 %1662 }
 0x485   : > { %v1683_v50 = vsub.f32 %v1376_v5, %v1663_v38 }
 0x487   : > { %v1692_v51 = vmul.f32 1.442695, %v1683_v50 }
 0x489   : > { %4274 = vpow2.f32 %v1692_v51 }
 0x48c   : > { %v1666_v43 = vpop.xlane.xlu0 %1665 }
 0x48d   : > { %v1684_v52 = vsub.f32 %v1422_v16, %v1666_v43 }
 0x48e   : > { %v5009_v54 = vpop.eup %4272 }
 0x48f   : > { %v1694_v55 = vmul.f32 1.442695, %v1684_v52  ;;  %v1706_v56 = vsel %vm1657_vm3, %v5009_v54, 0.0 }
 0x490   : > { %v1672_v57 = vpop.xlane.xlu0 %1671  ;;  %1707 = vadd.xlane.f32.xlu0 %v1706_v56 }
 0x491   : > { %4276 = vpow2.f32 %v1694_v55  ;;  %v1686_v59 = vsub.f32 %v1514_v18, %v1672_v57 }
 0x493   : > { %v1698_v61 = vmul.f32 1.442695, %v1686_v59 }
 0x494   : > { %v1669_v58 = vpop.xlane.xlu1 %1668  ;;  %v1678_v62 = vpop.xlane.xlu0 %1677 }
 0x495   : > { %4278 = vpow2.f32 %v1698_v61  ;;  %v1685_v63 = vsub.f32 %v1468_v27, %v1669_v58  ;;  %v1688_v1 = vsub.f32 %v1606_v23, %v1678_v62 }
 0x496   : > { %v5013_v53 = vpop.eup %4274 }
 0x497   : > { %v1696_v2 = vmul.f32 1.442695, %v1685_v63  ;;  %v1702_v60 = vmul.f32 1.442695, %v1688_v1  ;;  %v1709_v4 = vsel %vm1657_vm3, %v5013_v53, 0.0 }
 0x498   : > { %1710 = vadd.xlane.f32.xlu1 %v1709_v4  ;;  %v1070_v7 = vpop.permute.xlu0 %1069 }
 0x499   : > { %4280 = vpow2.f32 %v1696_v2 }
 0x49a   : > { %4282 = vpow2.f32 %v1702_v60 }
 0x49c   : > { %v1675_v5 = vpop.xlane.xlu1 %1674  ;;  %v1079_v13 = vpop.permute.xlu0 %1078 }
 0x49d   : > { %v1687_v8 = vsub.f32 %v1560_v35, %v1675_v5  ;;  %v1090_v28 = vcombine.low %v4992_v48, %v1079_v13 }
 0x49e   : > { %v5017_v9 = vpop.eup %4276 }
 0x49f   : > { %v1700_v10 = vmul.f32 1.442695, %v1687_v8  ;;  %v1712_v11 = vsel %vm1657_vm3, %v5017_v9, 0.0  ;;  %v1097_v34 = vrot.slane %v1090_v28, %v4853_v6 }
 0x4a0   : > { %1713 = vadd.xlane.f32.xlu0 %v1712_v11  ;;  %v1085_v26 = vpop.permute.xlu0 %1084 }
 0x4a1   : > { %4284 = vpow2.f32 %v1700_v10 }
 0x4a2   : > { %v5021_v12 = vpop.eup %4278 }
 0x4a3   : > { %v1718_v15 = vsel %vm1657_vm3, %v5021_v12, 0.0 }
 0x4a4   : > { %v1681_v16 = vpop.xlane.xlu1 %1680  ;;  %1719 = vadd.xlane.f32.xlu1 %v1718_v15 }
 0x4a5   : > { %v1689_v17 = vsub.f32 %v1652_v44, %v1681_v16 }
 0x4a6   : > { %v5025_v18 = vpop.eup %4280 }
 0x4a7   : > { %v5027_v19 = vpop.eup %4282  ;;  %v1704_v20 = vmul.f32 1.442695, %v1689_v17  ;;  %v1715_v21 = vsel %vm1657_vm3, %v5025_v18, 0.0 }
 0x4a8   : > { %v1073_v23 = vpop.permute.xlu1 %1072  ;;  %1716 = vadd.xlane.f32.xlu0 %v1715_v21  ;;  %v1724_v24 = vsel %vm1657_vm3, %v5027_v19, 0.0 }
 0x4a9   : > { %4286 = vpow2.f32 %v1704_v20  ;;  %1725 = vadd.xlane.f32.xlu1 %v1724_v24  ;;  %v1098_v27 = vcombine.low %v1073_v23, %v1085_v26 }
 0x4ab   : > { %v1105_v32 = vrot.slane %v1098_v27, %v4853_v6 }
 0x4ac   : > { %v1076_v30 = vpop.permute.xlu1 %1075 }
 0x4ad   : > { %v1106_v37 = vcombine.low %v1097_v34, %v1105_v32  ;;  %v1107_v39 = vcombine.high %v1097_v34, %v1105_v32 }
 0x4ae   : > { %v5034_v31 = vpop.eup %4284 }
 0x4af   : > { %v1721_v33 = vsel %vm1657_vm3, %v5034_v31, 0.0  ;;  %v1114_v45 = vrot.slane %v1106_v37, %v4858_v14  ;;  %v1121_v48 = vrot.slane %v1107_v39, %v4858_v14 }
 0x4b0   : > { %v1082_v35 = vpop.permute.xlu1 %1081  ;;  %1722 = vadd.xlane.f32.xlu0 %v1721_v33 }
 0x4b1   : > { %v1124_v25 = vcombine.low %v1070_v7, %v1082_v35  ;;  %v1122_v49 = vcombine.high %v1114_v45, %v4572_v22  ;;  %v1123_v51 = vcombine.high %v1121_v48, %v4572_v22  ;;  %v1162_v43 = vshrl.u32 %v1114_v45, 16 }
 0x4b2   : > { %v1178_v61 = vshrl.u32 %v1121_v48, 16 }
 0x4b3   : > { %v1131_v29 = vrot.slane %v1124_v25, %v4853_v6  ;;  %v1170_v59 = vshrl.u32 %v1122_v49, 16  ;;  %v1186_v4 = vshrl.u32 %v1123_v51, 16 }
 0x4b4   : > { %v1088_v40 = vpop.permute.xlu1 %1087 }
 0x4b5   : > { %v1132_v41 = vcombine.low %v1076_v30, %v1088_v40 }
 0x4b6   : > { %v5040_v44 = vpop.eup %4286 }
 0x4b7   : > { %v1139_v46 = vrot.slane %v1132_v41, %v4853_v6  ;;  %v1727_v47 = vsel %vm1657_vm3, %v5040_v44, 0.0 }
 0x4b8   : > { %1728 = vadd.xlane.f32.xlu0 %v1727_v47 }
 0x4b9   : > { %v1140_v42 = vcombine.low %v1131_v29, %v1139_v46  ;;  %v1141_v36 = vcombine.high %v1131_v29, %v1139_v46 }
 0x4bb   : > { %v1148_v38 = vrot.slane %v1140_v42, %v4858_v14  ;;  %v1155_v50 = vrot.slane %v1141_v36, %v4858_v14 }
 0x4bd   : > { %v1156_v52 = vcombine.high %v1148_v38, %v4572_v22  ;;  %v1157_v55 = vcombine.high %v1155_v50, %v4572_v22  ;;  %v1160_v56 = vpack.i.b16 %v1148_v38, %v1114_v45  ;;  %v1163_v57 = vshrl.u32 %v1148_v38, 16 }
 0x4be   : > { %v1176_v58 = vpack.i.b16 %v1155_v50, %v1121_v48  ;;  %v1179_v62 = vshrl.u32 %v1155_v50, 16 }
 0x4bf   : > { %v1164_v63 = vpack.i.b16 %v1163_v57, %v1162_v43  ;;  %v1168_v1 = vpack.i.b16 %v1156_v52, %v1122_v49  ;;  %v1171_v2 = vshrl.u32 %v1156_v52, 16  ;;  %v1184_v60 = vpack.i.b16 %v1157_v55, %v1123_v51 }
 0x4c0   : > { %v1180_v5 = vpack.i.b16 %v1179_v62, %v1178_v61  ;;  %v1187_v7 = vshrl.u32 %v1157_v55, 16  ;;  %v1190_v8 = vcombine.low %v1160_v56, %v1176_v58 }
 0x4c1   : > { %v1172_v10 = vpack.i.b16 %v1171_v2, %v1170_v59  ;;  %v1198_v11 = vcombine.low %v1168_v1, %v1184_v60 }
 0x4c2   : > { %v1188_v13 = vpack.i.b16 %v1187_v7, %v1186_v4  ;;  %v1224_v15 = vcombine.low %v1164_v63, %v1180_v5  ;;  %v1197_v16 = vrot.slane %v1190_v8, %v4853_v6 }
 0x4c3   : > { %v1205_v17 = vrot.slane %v1198_v11, %v4853_v6 }
 0x4c4   : > { %v1232_v20 = vcombine.low %v1172_v10, %v1188_v13  ;;  %v1231_v24 = vrot.slane %v1224_v15, %v4853_v6 }
 0x4c5   : > { %v1206_v21 = vcombine.low %v1197_v16, %v1205_v17  ;;  %v1207_v23 = vcombine.high %v1197_v16, %v1205_v17 }
 0x4c6   : > { %v1239_v26 = vrot.slane %v1232_v20, %v4853_v6 }
 0x4c7   : > { %v1214_v27 = vrot.slane %v1206_v21, %v4858_v14  ;;  %v1221_v28 = vrot.slane %v1207_v23, %v4858_v14 }
 0x4c8   : > { %v1240_v30 = vcombine.low %v1231_v24, %v1239_v26  ;;  %v1241_v32 = vcombine.high %v1231_v24, %v1239_v26 }
 0x4c9   : > { %v1222_v33 = vcombine.high %v1214_v27, %v4572_v22  ;;  %v1223_v34 = vcombine.high %v1221_v28, %v4572_v22  ;;  %v1261_v25 = vshrl.u32 %v1214_v27, 16  ;;  %v1273_v39 = vshrl.u32 %v1221_v28, 16 }
 0x4ca   : > { %v1248_v35 = vrot.slane %v1240_v30, %v4858_v14  ;;  %v1255_v37 = vrot.slane %v1241_v32, %v4858_v14 }
 0x4cb   : > { %v1267_v46 = vshrl.u32 %v1222_v33, 16  ;;  %v1279_v42 = vshrl.u32 %v1223_v34, 16 }
 0x4cc   : > { %v1260_v40 = vpack.i.b16 %v1248_v35, %v1214_v27  ;;  %v1262_v41 = vshrl.u32 %v1248_v35, 16  ;;  %v1256_v45 = vcombine.high %v1248_v35, %v4572_v22  ;;  %v1272_v29 = vpack.i.b16 %v1255_v37, %v1221_v28 }
 0x4cd   : > { %v1274_v47 = vshrl.u32 %v1255_v37, 16  ;;  %v1257_v48 = vcombine.high %v1255_v37, %v4572_v22 }
 0x4ce   : > { %v1759_v36 = vsel %vm1757_vm4, %v1260_v40, 0  ;;  %v1263_v49 = vpack.i.b16 %v1262_v41, %v1261_v25  ;;  %v1266_v38 = vpack.i.b16 %v1256_v45, %v1222_v33  ;;  %v1268_v50 = vshrl.u32 %v1256_v45, 16 }
 0x4cf   : > { %4015 = vmatpush3.bf16.msra.mxu0 %v1759_v36  ;;  %v1943_v51 = vsel %vm1757_vm4, %v1272_v29, 0  ;;  %v1275_v43 = vpack.i.b16 %v1274_v47, %v1273_v39  ;;  %v1278_v52 = vpack.i.b16 %v1257_v48, %v1223_v34  ;;  %v1280_v55 = vshrl.u32 %v1257_v48, 16  ;;  %v4231_v39 = vld [vmem:[#allocation7 + $0x30] sm:$0xff]  }
 0x4d0   : > { %v1805_v56 = vsel %vm1757_vm4, %v1263_v49, 0  ;;  %4026 = vmatprep.subr.bf16.mxu0 %v4571_v3  ;;  %v1851_v57 = vsel %vm1757_vm4, %v1266_v38, 0  ;;  %v1269_v59 = vpack.i.b16 %v1268_v50, %v1267_v46 }
 0x4d1   : > { %4021 = vmatpush3.bf16.msra.mxu1 %v1805_v56  ;;  %v1989_v61 = vsel %vm1757_vm4, %v1275_v43, 0  ;;  %v2035_v58 = vsel %vm1757_vm4, %v1278_v52, 0  ;;  %v1281_v62 = vpack.i.b16 %v1280_v55, %v1279_v42 }
 0x4d2   : > { %4032 = vmatprep.subr.bf16.mxu1 %v4571_v3  ;;  %v1897_v63 = vsel %vm1757_vm4, %v1269_v59, 0 }
 0x4d3   : > { %v2081_v1 = vsel %vm1757_vm4, %v1281_v62, 0 }
 0x519   : > { %v1708_v2 = vpop.xlane.xlu0 %1707 }
 0x51a   : > { %4288 = vrcp.f32 %v1708_v2 }
 0x521   : > { %v1711_v60 = vpop.xlane.xlu1 %1710 }
 0x522   : > { %4290 = vrcp.f32 %v1711_v60 }
 0x527   : > { %v4289_v4 = vpop.eup %4288 }
 0x528   : > { %v1738_v5 = vmul.f32 %v4289_v4, %v5009_v54 }
 0x529   : > { %v1714_v7 = vpop.xlane.xlu0 %1713 }
 0x52a   : > { %4292 = vrcp.f32 %v1714_v7  ;;  %v1746_v8 = vpack.c.bf16 %v1738_v5, %v1738_v5 }
 0x52c   : > { %4017 = vmatmul.mubr.msk.bf16.vlgmr.msra.gmra.mxu0 %vm1657_vm3, %v1746_v8 }
 0x52d   : > { %4027 = vmatpush3.bf16.msra.mxu0 %v1851_v57  ;;  %v1720_v10 = vpop.xlane.xlu1 %1719  ;;  %4028 = vmatprep.mubr.msk.bf16.mxu0 %vm4573_vm0, %v4571_v3 }
 0x52e   : > { %4294 = vrcp.f32 %v1720_v10  ;;  %4038 = vmatprep.subr.bf16.mxu0 %v4571_v3 }
 0x52f   : > { %v4291_v11 = vpop.eup %4290 }
 0x530   : > { %v1739_v13 = vmul.f32 %v4291_v11, %v5013_v53  ;;  %v4232_v11 = vld [vmem:[#allocation7 + $0x28] sm:$0xff]  }
 0x531   : > { %v1717_v15 = vpop.xlane.xlu0 %1716 }
 0x532   : > { %4296 = vrcp.f32 %v1717_v15  ;;  %v1747_v16 = vpack.c.bf16 %v1739_v13, %v1739_v13  ;;  %v1726_v54 = vpop.xlane.xlu1 %1725 }
 0x533   : > { %4298 = vrcp.f32 %v1726_v54 }
 0x534   : > { %4023 = vmatmul.mubr.msk.bf16.vlgmr.msra.gmra.mxu1 %vm1657_vm3, %v1747_v16 }
 0x535   : > { %4033 = vmatpush3.bf16.msra.mxu1 %v1897_v63  ;;  %4034 = vmatprep.mubr.msk.bf16.mxu1 %vm4573_vm0, %v4571_v3 }
 0x536   : > { %4044 = vmatprep.subr.bf16.mxu1 %v4571_v3 }
 0x537   : > { %v4293_v17 = vpop.eup %4292 }
 0x538   : > { %v1740_v20 = vmul.f32 %v4293_v17, %v5017_v9 }
 0x539   : > { %v1723_v21 = vpop.xlane.xlu0 %1722 }
 0x53a   : > { %4300 = vrcp.f32 %v1723_v21  ;;  %v1748_v23 = vpack.c.bf16 %v1740_v20, %v1740_v20 }
 0x53b   : > { %v4295_v53 = vpop.eup %4294 }
 0x53c   : > { %4029 = vmatmul.mubr.msk.bf16.vlgmr.msra.gmra.mxu0 %vm1657_vm3, %v1748_v23  ;;  %v1742_v24 = vmul.f32 %v4295_v53, %v5021_v12 }
 0x53d   : > { %4039 = vmatpush3.bf16.msra.mxu0 %v1943_v51  ;;  %4040 = vmatprep.mubr.msk.bf16.mxu0 %vm4573_vm0, %v4571_v3 }
 0x53e   : > { %4050 = vmatprep.subr.bf16.mxu0 %v4571_v3  ;;  %v1750_v30 = vpack.c.bf16 %v1742_v24, %v1742_v24 }
 0x53f   : > { %v4297_v26 = vpop.eup %4296 }
 0x540   : > { %v1741_v27 = vmul.f32 %v4297_v26, %v5025_v18  ;;  %v4299_v32 = vpop.eup %4298 }
 0x541   : > { %v1729_v28 = vpop.xlane.xlu0 %1728  ;;  %v1744_v12 = vmul.f32 %v4299_v32, %v5027_v19 }
 0x542   : > { %4302 = vrcp.f32 %v1729_v28  ;;  %v1749_v9 = vpack.c.bf16 %v1741_v27, %v1741_v27  ;;  %v4233_v28 = vld [vmem:[#allocation7 + $0x20] sm:$0xff]  }
 0x543   : > { %v1752_v35 = vpack.c.bf16 %v1744_v12, %v1744_v12 }
 0x544   : > { %4035 = vmatmul.mubr.msk.bf16.vlgmr.msra.gmra.mxu1 %vm1657_vm3, %v1749_v9  ;;  %4041 = vmatmul.mubr.msk.bf16.vlgmr.msra.gmra.mxu0 %vm1657_vm3, %v1750_v30 }
 0x545   : > { %4045 = vmatpush3.bf16.msra.mxu1 %v1989_v61  ;;  %4051 = vmatpush3.bf16.msra.mxu0 %v2035_v58 }
 0x546   : > { %4046 = vmatprep.mubr.msk.bf16.mxu1 %vm4573_vm0, %v4571_v3  ;;  %4052 = vmatprep.mubr.msk.bf16.mxu0 %vm4573_vm0, %v4571_v3 }
 0x547   : > { %v4301_v18 = vpop.eup %4300  ;;  %4056 = vmatprep.subr.bf16.mxu1 %v4571_v3  ;;  %4062 = vmatprep.subr.bf16.mxu0 %v4571_v3 }
 0x548   : > { %v1743_v33 = vmul.f32 %v4301_v18, %v5034_v31  ;;  %v4230_v31 = vld [vmem:[#allocation7 + $0x38] sm:$0xff]  }
 0x54a   : > { %v1751_v34 = vpack.c.bf16 %v1743_v33, %v1743_v33 }
 0x54c   : > { %4047 = vmatmul.mubr.msk.bf16.vlgmr.msra.gmra.mxu1 %vm1657_vm3, %v1751_v34  ;;  %4053 = vmatmul.mubr.msk.bf16.vlgmr.msra.gmra.mxu0 %vm1657_vm3, %v1752_v35  ;;  %v4234_v34 = vld [vmem:[#allocation7 + $0x18] sm:$0xff]  }
 0x54d   : > { %4057 = vmatpush3.bf16.msra.mxu1 %v2081_v1  ;;  %4058 = vmatprep.mubr.msk.bf16.mxu1 %vm4573_vm0, %v4571_v3 }
 0x54e   : > { %4078 = vmatprep.mubr.msk.bf16.mxu0 %vm4573_vm0, %v4571_v3  ;;  %4063 = vmatpush3.bf16.msra.mxu0 %v4230_v31 }
 0x54f   : > { %v4303_v19 = vpop.eup %4302  ;;  %4064 = vmatprep.subr.bf16.mxu0 %v4571_v3 }
 0x550   : > { %v1745_v37 = vmul.f32 %v4303_v19, %v5040_v44 }
 0x552   : > { %v1753_v25 = vpack.c.bf16 %v1745_v37, %v1745_v37  ;;  %4065 = vmatpush3.bf16.msra.mxu0 %v4231_v39 }
 0x553   : > { %4066 = vmatprep.subr.bf16.mxu0 %v4571_v3 }
 0x554   : > { %4059 = vmatmul.mubr.msk.bf16.vlgmr.msra.gmra.mxu1 %vm1657_vm3, %v1753_v25 }
 0x555   : > { %3026 = vmatprep.mubr.bf16.mxu1 %v4572_v22 }
 0x556   : > { %4067 = vmatpush3.bf16.msra.mxu0 %v4232_v11 }
 0x557   : > { %4068 = vmatprep.subr.bf16.mxu0 %v4571_v3 }
 0x55a   : > { %4069 = vmatpush3.bf16.msra.mxu0 %v4233_v28 }
 0x55b   : > { %4070 = vmatprep.subr.bf16.mxu0 %v4571_v3 }
 0x55e   : > { %4071 = vmatpush3.bf16.msra.mxu0 %v4234_v34 }
 0x55f   : > { %4072 = vmatprep.subr.bf16.mxu0 %v4571_v3 }
 0x5ec   : > { %v1795_v40 = vpop.f32.mrf.mxu0 }
 0x5ee   : > { %v4018_v41 = vpop.f32.mrf.mxu0 }
 0x5f0   : > { %v1798_v45 = vpop.f32.mrf.mxu0 }
 0x5f2   : > { %v4019_v29 = vpop.f32.mrf.mxu0 }
 0x5f4   : > { %v1841_v46 = vpop.f32.mrf.mxu1 }
 0x5f6   : > { %v4024_v47 = vpop.f32.mrf.mxu1 }
 0x5f8   : > { %v1844_v44 = vpop.f32.mrf.mxu1 }
 0x5fa   : > { %v4025_v48 = vpop.f32.mrf.mxu1 }
 0x5fb   : > { %v4235_v48 = vld [vmem:[#allocation7 + $0x10] sm:$0xff]  }
 0x5fc   : > { %v1887_v42 = vpop.f32.mrf.mxu0  ;;  %4073 = vmatpush3.bf16.msra.mxu0 %v4235_v48 }
 0x5fd   : > { %v2123_v50 = vcombine.low %v1795_v40, %v1887_v42  ;;  %v2124_v51 = vcombine.high %v1795_v40, %v1887_v42  ;;  %4074 = vmatprep.subr.bf16.mxu0 %v4571_v3 }
 0x5fe   : > { %v4030_v36 = vpop.f32.mrf.mxu0 }
 0x5ff   : > { %v2131_v61 = vrot.slane %v2123_v50, %v4853_v6  ;;  %v2138_v58 = vrot.slane %v2124_v51, %v4853_v6 }
 0x600   : > { %v1890_v49 = vpop.f32.mrf.mxu0 }
 0x602   : > { %v4031_v38 = vpop.f32.mrf.mxu0 }
 0x604   : > { %v1933_v43 = vpop.f32.mrf.mxu1  ;;  %v5114_v52 = vpop.f32.mrf.mxu0 }
 0x605   : > { %v2139_v55 = vcombine.low %v1841_v46, %v1933_v43  ;;  %v2140_v56 = vcombine.high %v1841_v46, %v1933_v43 }
 0x606   : > { %v4036_v57 = vpop.f32.mrf.mxu1  ;;  %v4042_v59 = vpop.f32.mrf.mxu0 }
 0x607   : > { %v2147_v62 = vrot.slane %v2139_v55, %v4853_v6  ;;  %v2154_v63 = vrot.slane %v2140_v56, %v4853_v6 }
 0x608   : > { %v1936_v1 = vpop.f32.mrf.mxu1  ;;  %v1982_v2 = vpop.f32.mrf.mxu0 }
 0x609   : > { %v2187_v60 = vcombine.low %v2131_v61, %v2147_v62  ;;  %v2188_v4 = vcombine.high %v2131_v61, %v2147_v62  ;;  %v2203_v5 = vcombine.low %v2138_v58, %v2154_v63  ;;  %v2204_v7 = vcombine.high %v2138_v58, %v2154_v63  ;;  %v4236_v2 = vld [vmem:[#allocation7 + $0x8] sm:$0xff]  }
 0x60a   : > { %v4037_v8 = vpop.f32.mrf.mxu1  ;;  %v4043_v10 = vpop.f32.mrf.mxu0  ;;  %4075 = vmatpush3.bf16.msra.mxu0 %v4236_v2 }
 0x60b   : > { %v2195_v13 = vrot.slane %v2187_v60, %v4858_v14  ;;  %v2202_v15 = vrot.slane %v2188_v4, %v4858_v14  ;;  %v2211_v16 = vrot.slane %v2203_v5, %v4858_v14  ;;  %v2218_v54 = vrot.slane %v2204_v7, %v4858_v14  ;;  %4076 = vmatprep.subr.bf16.mxu0 %v4571_v3 }
 0x60c   : > { %v2025_v17 = vpop.f32.mrf.mxu1  ;;  %v2071_v20 = vpop.f32.mrf.mxu0 }
 0x60d   : > { %v3728_v21 = vcombine.low %v2195_v13, %v2202_v15  ;;  %v3730_v23 = vcombine.high %v2195_v13, %v2202_v15  ;;  %v3732_v53 = vcombine.low %v2211_v16, %v2218_v54  ;;  %v3734_v24 = vcombine.high %v2211_v16, %v2218_v54 }
 0x60e   : > { %v4048_v26 = vpop.f32.mrf.mxu1  ;;  %v4054_v27 = vpop.f32.mrf.mxu0  ;;  %v2155_v31 = vcombine.low %v5114_v52, %v2071_v20  ;;  %v2156_v39 = vcombine.high %v5114_v52, %v2071_v20  ;;  %v4237_v20 = vld [vmem:[#allocation7] sm:$0xff]  }
 0x60f   : > { %v2267_v9 = vrot.slane %v3728_v21, %v4853_v6  ;;  %v2283_v30 = vrot.slane %v3730_v23, %v4853_v6  ;;  %v2299_v32 = vrot.slane %v3732_v53, %v4853_v6  ;;  %v2315_v12 = vrot.slane %v3734_v24, %v4853_v6  ;;  %4077 = vmatpush3.bf16.msra.mxu0 %v4237_v20  ;;  %v2600_v20 = vld [vmem:[#allocation8 + $0x100] sm:$0xff] }
 0x610   : > { %v2028_v18 = vpop.f32.mrf.mxu1  ;;  %v2074_v33 = vpop.f32.mrf.mxu0  ;;  %v2163_v50 = vrot.slane %v2155_v31, %v4853_v6  ;;  %v2170_v52 = vrot.slane %v2156_v39, %v4853_v6 }
 0x611   : > { %v2324_v35 = vcombine.high %v2267_v9, %v2283_v30  ;;  %v2356_v19 = vcombine.high %v2299_v32, %v2315_v12  ;;  %v2323_v37 = vcombine.low %v2267_v9, %v2283_v30  ;;  %v2355_v25 = vcombine.low %v2299_v32, %v2315_v12 }
 0x612   : > { %v4049_v40 = vpop.f32.mrf.mxu1  ;;  %v4055_v41 = vpop.f32.mrf.mxu0 }
 0x613   : > { %v2338_v45 = vrot.slane %v2324_v35, %v4858_v14  ;;  %v2370_v29 = vrot.slane %v2356_v19, %v4858_v14  ;;  %v5135_v46 = vrot.slane %v2323_v37, %v4858_v14  ;;  %v5138_v47 = vrot.slane %v2355_v25, %v4858_v14 }
 0x614   : > { %v2117_v44 = vpop.f32.mrf.mxu1 }
 0x615   : > { %v2171_v42 = vcombine.low %v2025_v17, %v2117_v44  ;;  %v2172_v36 = vcombine.high %v2025_v17, %v2117_v44  ;;  %v2389_v49 = vcombine.low %v2338_v45, %v2370_v29  ;;  %v2388_v38 = vcombine.high %v5135_v46, %v5138_v47 }
 0x616   : > { %v4060_v51 = vpop.f32.mrf.mxu1  ;;  %v2387_v43 = vcombine.low %v5135_v46, %v5138_v47  ;;  %v2390_v59 = vcombine.high %v2338_v45, %v2370_v29  ;;  %v3736_v46 = vld [vmem:[%s5272_s5 + $0x4] ss:$0 sm:$0xff] }
 0x617   : > { %v2179_v55 = vrot.slane %v2171_v42, %v4853_v6  ;;  %v2186_v56 = vrot.slane %v2172_v36, %v4853_v6  ;;  %2400 = vrot.lane.b32.xlu0 %v2389_v49, %s4580_s13  ;;  %2396 = vrot.lane.b32.xlu1 %v2388_v38, %s4578_s21  ;;  %v4322_v42 = vld [vmem:[%s4780_s2] sm:$0xff]  ;;  %v2628_v51 = vld [vmem:[#allocation8 + $0x1e0] sm:$0xff] }
 0x618   : > { %v2120_v57 = vpop.f32.mrf.mxu1 }
 0x619   : > { %v2219_v61 = vcombine.low %v2163_v50, %v2179_v55  ;;  %v2220_v58 = vcombine.high %v2163_v50, %v2179_v55  ;;  %v2235_v62 = vcombine.low %v2170_v52, %v2186_v56  ;;  %v2236_v63 = vcombine.high %v2170_v52, %v2186_v56  ;;  %v2624_v50 = vld [vmem:[#allocation8 + $0x1c0] sm:$0xff]  ;;  %v2629_v56 = vld [vmem:[#allocation8 + $0x1e8] sm:$0xff] }
 0x61a   : > { %v4061_v1 = vpop.f32.mrf.mxu1  ;;  %v3803_v52 = vcombine.low %v2624_v50, %v2628_v51  ;;  %v3804_v55 = vcombine.high %v2624_v50, %v2628_v51  ;;  %v2616_v57 = vld [vmem:[#allocation8 + $0x180] sm:$0xff] }
 0x61b   : > { %v2227_v60 = vrot.slane %v2219_v61, %v4858_v14  ;;  %v2234_v4 = vrot.slane %v2220_v58, %v4858_v14  ;;  %v2243_v5 = vrot.slane %v2235_v62, %v4858_v14  ;;  %v2250_v7 = vrot.slane %v2236_v63, %v4858_v14  ;;  %2404 = vrot.lane.b32.xlu1 %v2390_v59, %s4577_s20  ;;  %v2620_v59 = vld [vmem:[#allocation8 + $0x1a0] sm:$0xff]  ;;  %v2617_v63 = vld [vmem:[#allocation8 + $0x188] sm:$0xff] }
 0x61c   : > { %v3796_v62 = vcombine.high %v2616_v57, %v2620_v59  ;;  %v2621_v1 = vld [vmem:[#allocation8 + $0x1a8] sm:$0xff]  ;;  %2994 = vmatprep.subr.bf16.mxu1 %v3804_v55  ;;  %v2572_v55 = vld [vmem:[#allocation8 + $0x20] sm:$0xff] }
 0x61d   : > { %v3729_v8 = vcombine.low %v2227_v60, %v2234_v4  ;;  %v3731_v10 = vcombine.high %v2227_v60, %v2234_v4  ;;  %v3733_v11 = vcombine.low %v2243_v5, %v2250_v7  ;;  %v3735_v13 = vcombine.high %v2243_v5, %v2250_v7  ;;  %2995 = vmatpush1.bf16.msra.mxu1 %v3803_v52  ;;  %v2568_v52 = vld [vmem:[#allocation8] sm:$0xff] }
 0x61e   : > { %v3798_v2 = vcombine.high %v2617_v63, %v2621_v1  ;;  %v3795_v60 = vcombine.low %v2616_v57, %v2620_v59  ;;  %2996 = vmatprep.subr.bf16.mxu1 %v3796_v62  ;;  %v3797_v4 = vcombine.low %v2617_v63, %v2621_v1  ;;  %v2573_v57 = vld [vmem:[#allocation8 + $0x28] sm:$0xff]  ;;  %v3747_v63 = vcombine.low %v2568_v52, %v2572_v55 }
 0x61f   : > { %v2274_v15 = vrot.slane %v3729_v8, %v4853_v6  ;;  %v2290_v16 = vrot.slane %v3731_v10, %v4853_v6  ;;  %v2306_v54 = vrot.slane %v3733_v11, %v4853_v6  ;;  %v2322_v17 = vrot.slane %v3735_v13, %v4853_v6  ;;  %v2608_v11 = vld [vmem:[#allocation8 + $0x140] sm:$0xff] }
 0x620   : > { %v2612_v13 = vld [vmem:[#allocation8 + $0x160] sm:$0xff] }
 0x621   : > { %v2339_v21 = vcombine.low %v2274_v15, %v2290_v16  ;;  %v2371_v23 = vcombine.low %v2306_v54, %v2322_v17  ;;  %v2340_v53 = vcombine.high %v2274_v15, %v2290_v16  ;;  %v2372_v24 = vcombine.high %v2306_v54, %v2322_v17  ;;  %2997 = vmatpush1.bf16.msra.mxu1 %v3795_v60  ;;  %v2609_v15 = vld [vmem:[#allocation8 + $0x148] sm:$0xff] }
 0x622   : > { %v3787_v16 = vcombine.low %v2608_v11, %v2612_v13  ;;  %v3788_v54 = vcombine.high %v2608_v11, %v2612_v13  ;;  %v2613_v17 = vld [vmem:[#allocation8 + $0x168] sm:$0xff]  ;;  %v3745_v11 = vld [vmem:[%s5272_s5 + $0x2] ss:$0 sm:$0xff] }
 0x623   : > { %v2347_v26 = vrot.slane %v2339_v21, %v4858_v14  ;;  %v2379_v27 = vrot.slane %v2371_v23, %v4858_v14  ;;  %v2354_v9 = vrot.slane %v2340_v53, %v4858_v14  ;;  %v2386_v30 = vrot.slane %v2372_v24, %v4858_v14  ;;  %v2604_v21 = vld [vmem:[#allocation8 + $0x120] sm:$0xff] }
 0x624   : > { %v3789_v23 = vcombine.low %v2609_v15, %v2613_v17  ;;  %v3790_v53 = vcombine.high %v2609_v15, %v2613_v17  ;;  %v3780_v24 = vcombine.high %v2600_v20, %v2604_v21  ;;  %2998 = vmatprep.subr.bf16.mxu1 %v3788_v54  ;;  %v3746_v15 = vld [vmem:[%s5272_s5 + $0x3] ss:$0 sm:$0xff] }
 0x625   : > { %v2392_v28 = vcombine.high %v2347_v26, %v2379_v27  ;;  %v2391_v3 = vcombine.low %v2347_v26, %v2379_v27  ;;  %v2394_v6 = vcombine.high %v2354_v9, %v2386_v30  ;;  %v2393_v32 = vcombine.low %v2354_v9, %v2386_v30  ;;  %v2601_v26 = vld [vmem:[#allocation8 + $0x108] sm:$0xff]  ;;  %v2596_v9 = vld [vmem:[#allocation8 + $0xe0] sm:$0xff]  ;;  %2999 = vmatpush1.bf16.msra.mxu1 %v3787_v16  ;;  %v2618_v54 = vld [vmem:[#allocation8 + $0x190] sm:$0xff] }
 0x626   : > { %v2605_v27 = vld [vmem:[#allocation8 + $0x128] sm:$0xff]  ;;  %3000 = vmatprep.subr.bf16.mxu1 %v3780_v24  ;;  %v2622_v17 = vld [vmem:[#allocation8 + $0x1b0] sm:$0xff] }
 0x627   : > { %2412 = vrot.lane.b32.xlu0 %v2392_v28, %s4574_s28  ;;  %2408 = vrot.lane.b32.xlu1 %v2391_v3, %s4579_s18  ;;  %v2592_v28 = vld [vmem:[#allocation8 + $0xc0] sm:$0xff]  ;;  %v3782_v3 = vcombine.high %v2601_v26, %v2605_v27  ;;  %v2593_v30 = vld [vmem:[#allocation8 + $0xc8] sm:$0xff]  ;;  %v3800_v24 = vcombine.high %v2618_v54, %v2622_v17 }
 0x62b   : > { %2420 = vrot.lane.b32.xlu0 %v2394_v6, %s4575_s14  ;;  %2416 = vrot.lane.b32.xlu1 %v2393_v32, %s4576_s19  ;;  %v2597_v6 = vld [vmem:[#allocation8 + $0xe8] sm:$0xff]  ;;  %v3779_v32 = vcombine.low %v2600_v20, %v2604_v21  ;;  %v2619_v20 = vld [vmem:[#allocation8 + $0x198] sm:$0xff]  ;;  %s3849_s14 = sshll.u32 %s4646_s30, 7  ;;  %s364_s19 = scalar_lea.vmem [#allocation13], %s3679_s9 }
 0x62c   : > { %v2623_v21 = vld [vmem:[#allocation8 + $0x1b8] sm:$0xff]  ;;  %s3550_s20 = sshll.u32 %s364_s19, 4  ;;  %s3548_s13 = scalar_lea.hbm %s5274_s7, %s3849_s14  ;;  %s3551_s20 = int_to_ptr.vmem [resolvable:$true] %s3550_s20 }
 0x62d   : > { %3001 = vmatpush1.bf16.msra.mxu1 %v3779_v32  ;;  %s4481_s1 = scalar_lea.vmem %s3551_s20, 128  ;;  %s4584_s30 = smov [#allocation13]  }
 0x62e   : > { %p4482_p0 = scmp.ne.s32.totalorder %s3551_s20, %s4481_s1  ;;  %s4485_s2 = sshll.u32 %s4584_s30, 4  ;;  %s4486_s2 = int_to_ptr.vmem [resolvable:$false] %s4485_s2 }
 0x62f   : > { %s4487_s9 = scalar_lea.vmem %s4486_s2, 256  ;;  %p4488_p12 = scmp.lt.s32.totalorder %s3551_s20, %s4486_s2 }
 0x630   : > { %p4483_p8 = pnand %p4482_p0, %p5299_p2  ;;  %p4489_p3 = scmp.lt.s32.totalorder %s4487_s9, %s4481_s1 }
 0x632   : > { %p4484_p9 = pneg %p4483_p8  ;;  %p4490_p4 = por %p4489_p3, %p4488_p12 }
 0x634   : > { %p4491_p5 = pnand %p4490_p4, %p4484_p9 }
 0x689   : > { %v2397_v12 = vpop.permute.xlu1 %2396  ;;  %v2401_v18 = vpop.permute.xlu0 %2400 }
 0x68a   : > { %v2423_v33 = vsel %vm1288_vm1, %v2387_v43, %v2397_v12  ;;  %v2625_v43 = vld [vmem:[#allocation8 + $0x1c8] sm:$0xff]  ;;  %v3781_v12 = vcombine.low %v2601_v26, %v2605_v27  ;;  %v3802_v26 = vcombine.high %v2619_v20, %v2623_v21  ;;  %v2610_v27 = vld [vmem:[#allocation8 + $0x150] sm:$0xff] }
 0x68b   : > { %v2425_v35 = vsel %vm2424_vm5, %v2423_v33, %v2401_v18  ;;  %v3805_v61 = vcombine.low %v2625_v43, %v2629_v56  ;;  %v3806_v58 = vcombine.high %v2625_v43, %v2629_v56  ;;  %v3772_v18 = vcombine.high %v2592_v28, %v2596_v9  ;;  %v2569_v56 = vld [vmem:[#allocation8 + $0x8] sm:$0xff] }
 0x68c   : > { %v3774_v33 = vcombine.high %v2593_v30, %v2597_v6  ;;  %v3750_v62 = vcombine.high %v2569_v56, %v2573_v57  ;;  %v3749_v1 = vcombine.low %v2569_v56, %v2573_v57 }
 0x68d   : > { %v2405_v34 = vpop.permute.xlu1 %2404  ;;  %3035 = vmatprep.subr.bf16.mxu0 %v3806_v58  ;;  %3002 = vmatprep.subr.bf16.mxu1 %v3772_v18  ;;  %v3748_v58 = vcombine.high %v2568_v52, %v2572_v55  ;;  %v2606_v18 = vld [vmem:[#allocation8 + $0x130] sm:$0xff]  ;;  %v2579_v52 = vld [vmem:[#allocation8 + $0x58] sm:$0xff] }
 0x68e   : > { %v2427_v14 = vsel %vm2426_vm6, %v2425_v35, %v2405_v34  ;;  %v2584_v34 = vld [vmem:[#allocation8 + $0x80] sm:$0xff]  ;;  %v2583_v55 = vld [vmem:[#allocation8 + $0x78] sm:$0xff] }
 0x68f   : > { %v2588_v35 = vld [vmem:[#allocation8 + $0xa0] sm:$0xff] }
 0x699   : > { %v2413_v19 = vpop.permute.xlu0 %2412  ;;  %v2409_v37 = vpop.permute.xlu1 %2408 }
 0x69a   : > { %v2429_v25 = vsel %vm2428_vm7, %v2427_v14, %v2409_v37  ;;  %v2585_v14 = vld [vmem:[#allocation8 + $0x88] sm:$0xff]  ;;  %v3771_v37 = vcombine.low %v2592_v28, %v2596_v9  ;;  %v2614_v28 = vld [vmem:[#allocation8 + $0x170] sm:$0xff]  ;;  %v2615_v9 = vld [vmem:[#allocation8 + $0x178] sm:$0xff] }
 0x69b   : > { %v2431_v39 = vsel %vm2430_vm8, %v2429_v25, %v2413_v19  ;;  %v2589_v19 = vld [vmem:[#allocation8 + $0xa8] sm:$0xff]  ;;  %v5184_v25 = vld [vmem:[#allocation8 + $0x1d0] sm:$0xff] }
 0x69c   : > { %3003 = vmatpush1.bf16.msra.mxu1 %v3771_v37  ;;  %v3765_v50 = vcombine.low %v2585_v14, %v2589_v19 }
 0x69d   : > { %v2421_v31 = vpop.permute.xlu0 %2420  ;;  %v2417_v40 = vpop.permute.xlu1 %2416 }
 0x69e   : > { %v2433_v41 = vsel %vm2432_vm9, %v2431_v39, %v2417_v40  ;;  %v5188_v39 = vld [vmem:[#allocation8 + $0x1d8] sm:$0xff]  ;;  %v3773_v40 = vcombine.low %v2593_v30, %v2597_v6  ;;  %v3801_v30 = vcombine.low %v2619_v20, %v2623_v21  ;;  %v3792_v6 = vcombine.high %v2610_v27, %v2614_v28  ;;  %v4244_v20 = vld [vmem:[#allocation10 + $0x30] sm:$0xff]  }
 0x69f   : > { %v2435_v45 = vsel %vm2434_vm10, %v2433_v41, %v2421_v31  ;;  %v5186_v31 = vld [vmem:[#allocation8 + $0x1f0] sm:$0xff]  ;;  %v3764_v41 = vcombine.high %v2584_v34, %v2588_v35 }
 0x6a0   : > { %v2436_v29 = vpack.c.bf16 %v2435_v45, %v2435_v45  ;;  %v3807_v45 = vcombine.low %v5184_v25, %v5186_v31  ;;  %v4245_v21 = vld [vmem:[#allocation10 + $0xb0] sm:$0xff]  }
 0x6a1   : > { %3004 = vmatprep.subr.bf16.mxu1 %v3764_v41 }
 0x6a2   : > { %4079 = vmatmul.mubr.bf16.vlgmr.msra.gmra.mxu0 %v2436_v29  ;;  %v5192_v29 = vld [vmem:[#allocation8 + $0x1f8] sm:$0xff] }
 0x6a3   : > { %3067 = vmatprep.mubr.bf16.mxu0 %v4572_v22  ;;  %3036 = vmatpush1.bf16.msra.mxu0 %v3805_v61  ;;  %v3810_v60 = vcombine.high %v5188_v39, %v5192_v29 }
 0x6a4   : > { %3037 = vmatprep.subr.bf16.mxu0 %v3798_v2  ;;  %v3808_v2 = vcombine.high %v5184_v25, %v5186_v31  ;;  %v2594_v25 = vld [vmem:[#allocation8 + $0xd0] sm:$0xff] }
 0x6a5   : > { %v2598_v31 = vld [vmem:[#allocation8 + $0xf0] sm:$0xff] }
 0x6a7   : > { %3038 = vmatpush1.bf16.msra.mxu0 %v3797_v4 }
 0x6a8   : > { %3039 = vmatprep.subr.bf16.mxu0 %v3790_v53 }
 0x6ab   : > { %3040 = vmatpush1.bf16.msra.mxu0 %v3789_v23 }
 0x6ac   : > { %3041 = vmatprep.subr.bf16.mxu0 %v3782_v3  ;;  %v2611_v3 = vld [vmem:[#allocation8 + $0x158] sm:$0xff] }
 0x6ad   : > { %v3794_v32 = vcombine.high %v2611_v3, %v2615_v9 }
 0x6af   : > { %3042 = vmatpush1.bf16.msra.mxu0 %v3781_v12  ;;  %v2602_v12 = vld [vmem:[#allocation8 + $0x110] sm:$0xff] }
 0x6b0   : > { %3043 = vmatprep.subr.bf16.mxu0 %v3774_v33  ;;  %v2603_v33 = vld [vmem:[#allocation8 + $0x118] sm:$0xff]  ;;  %v3783_v41 = vcombine.low %v2602_v12, %v2606_v18 }
 0x6b3   : > { %3044 = vmatpush1.bf16.msra.mxu0 %v3773_v40  ;;  %v2599_v40 = vld [vmem:[#allocation8 + $0xf8] sm:$0xff] }
 0x762   : > { %v2539_v47 = vpop.f32.mrf.mxu0 }
 0x763   : > { %v2540_v44 = vadd.f32 %v3736_v46, %v2539_v47  ;;  %v3766_v46 = vcombine.high %v2585_v14, %v2589_v19  ;;  %v2576_v47 = vld [vmem:[#allocation8 + $0x40] sm:$0xff]  ;;  %v3793_v14 = vcombine.low %v2611_v3, %v2615_v9  ;;  %v3784_v19 = vcombine.high %v2602_v12, %v2606_v18  ;;  %v4258_v12 = vld [vmem:[#allocation10 + $0x50] sm:$0xff]  }
 0x764   : > { %v4080_v48 = vpop.f32.mrf.mxu0  ;;  %v4252_v3 = vld [vmem:[#allocation10 + $0x20] sm:$0xff]   ;;  %v4259_v18 = vld [vmem:[#allocation10 + $0xd0] sm:$0xff]  }
 0x765   : > { %v5176_v36 = vadd.f32 %v4322_v42, %v2540_v44  ;;  %v2580_v44 = vld [vmem:[#allocation8 + $0x60] sm:$0xff]  ;;  %v3809_v48 = vcombine.low %v5188_v39, %v5192_v29  ;;  %v2577_v42 = vld [vmem:[#allocation8 + $0x48] sm:$0xff]  ;;  %3045 = vmatprep.subr.bf16.mxu0 %v3766_v46  ;;  %v2595_v39 = vld [vmem:[#allocation8 + $0xd8] sm:$0xff]  ;;  %v3776_v29 = vcombine.high %v2594_v25, %v2598_v31 }
 0x766   : > { %v2542_v49 = vpop.f32.mrf.mxu0  ;;  %v3756_v51 = vcombine.high %v2576_v47, %v2580_v44  ;;  %v3755_v59 = vcombine.low %v2576_v47, %v2580_v44  ;;  %3046 = vmatpush1.bf16.msra.mxu0 %v3765_v50  ;;  %v2586_v46 = vld [vmem:[#allocation8 + $0x90] sm:$0xff]  ;;  %v2587_v44 = vld [vmem:[#allocation8 + $0x98] sm:$0xff]  ;;  %v4253_v9 = vld [vmem:[#allocation10 + $0xa0] sm:$0xff]  }
 0x767   : > { %2546 = vadd.xlane.f32.xlu1 %v5176_v36  ;;  %v2581_v49 = vld [vmem:[#allocation8 + $0x68] sm:$0xff]  ;;  %v2590_v47 = vld [vmem:[#allocation8 + $0xb0] sm:$0xff] }
 0x768   : > { %v4081_v38 = vpop.f32.mrf.mxu0  ;;  %v3758_v43 = vcombine.high %v2577_v42, %v2581_v49  ;;  %v3757_v61 = vcombine.low %v2577_v42, %v2581_v49  ;;  %v3775_v42 = vcombine.low %v2594_v25, %v2598_v31  ;;  %v3777_v49 = vcombine.low %v2595_v39, %v2599_v40  ;;  %v4266_v25 = vld [vmem:[#allocation10 + $0x40] sm:$0xff]  }
 0x769   : > { %v3763_v38 = vcombine.low %v2584_v34, %v2588_v35  ;;  %v2607_v34 = vld [vmem:[#allocation8 + $0x138] sm:$0xff]  ;;  %v3791_v35 = vcombine.low %v2610_v27, %v2614_v28  ;;  %v3767_v56 = vcombine.low %v2586_v46, %v2590_v47  ;;  %v4250_v27 = vld [vmem:[#allocation10 + $0x60] sm:$0xff]  }
 0x76a   : > { %3047 = vmatprep.subr.bf16.mxu0 %v3758_v43  ;;  %v3786_v37 = vcombine.high %v2603_v33, %v2607_v34  ;;  %v2582_v43 = vld [vmem:[#allocation8 + $0x70] sm:$0xff]  ;;  %v4251_v28 = vld [vmem:[#allocation10 + $0xe0] sm:$0xff]  }
 0x76b   : > { %3005 = vmatpush1.bf16.msra.mxu1 %v3763_v38  ;;  %3048 = vmatpush1.bf16.msra.mxu0 %v3757_v61  ;;  %v3768_v38 = vcombine.high %v2586_v46, %v2590_v47  ;;  %v3762_v61 = vcombine.high %v2579_v52, %v2583_v55  ;;  %v4267_v31 = vld [vmem:[#allocation10 + $0xc0] sm:$0xff]   ;;  %v2648_v46 = vsub.s32 3, %v4850_v0 }
 0x76c   : > { %3006 = vmatprep.subr.bf16.mxu1 %v3756_v51  ;;  %3049 = vmatprep.subr.bf16.mxu0 %v3750_v62  ;;  %v2578_v51 = vld [vmem:[#allocation8 + $0x50] sm:$0xff] }
 0x76d   : > { %v2574_v62 = vld [vmem:[#allocation8 + $0x30] sm:$0xff] }
 0x76f   : > { %3007 = vmatpush1.bf16.msra.mxu1 %v3755_v59  ;;  %3050 = vmatpush1.bf16.msra.mxu0 %v3749_v1  ;;  %v3760_v59 = vcombine.high %v2578_v51, %v2582_v43  ;;  %v2575_v1 = vld [vmem:[#allocation8 + $0x38] sm:$0xff] }
 0x770   : > { %3008 = vmatprep.subr.bf16.mxu1 %v3748_v58  ;;  %3117 = vmatprep.subr.bf16.mxu0 %v3810_v60  ;;  %v2570_v58 = vld [vmem:[#allocation8 + $0x10] sm:$0xff]  ;;  %v3761_v60 = vcombine.low %v2579_v52, %v2583_v55 }
 0x773   : > { %3009 = vmatpush1.bf16.msra.mxu1 %v3747_v63  ;;  %v2571_v63 = vld [vmem:[#allocation8 + $0x18] sm:$0xff] }
 0x774   : > { %3076 = vmatprep.subr.bf16.mxu1 %v3808_v2  ;;  %v3759_v2 = vcombine.low %v2578_v51, %v2582_v43 }
 0x7f0   : > { %v2547_v5 = vpop.xlane.xlu1 %2546 }
 0x7f1   : > { %v2548_v7 = vmul.f32 0.0078125, %v2547_v5 }
 0x7f3   : > { %v5180_v8 = vsub.f32 %v5176_v36, %v2548_v7 }
 0x7f5   : > { %v2550_v10 = vmul.f32 %v5180_v8, %v5180_v8 }
 0x7f7   : > { %2551 = vadd.xlane.f32.xlu0 %v2550_v10 }
 0x880   : > { %v2552_v4 = vpop.xlane.xlu0 %2551 }
 0x881   : > { %v2553_v5 = vmul.f32 0.0078125, %v2552_v4  ;;  %v3752_v4 = vcombine.high %v2570_v58, %v2574_v62 }
 0x883   : > { %v2554_v7 = vadd.f32 1e-05, %v2553_v5  ;;  %v3754_v5 = vcombine.high %v2571_v63, %v2575_v1 }
 0x885   : > { %4304 = vrsqrt.f32 %v2554_v7  ;;  %v3751_v7 = vcombine.low %v2570_v58, %v2574_v62 }
 0x892   : > { %v4305_v10 = vpop.eup %4304 }
 0x893   : > { %v2556_v13 = vmul.f32 %v4305_v10, %v5180_v8  ;;  %v3799_v8 = vcombine.low %v2618_v54, %v2622_v17  ;;  %v3753_v10 = vcombine.low %v2571_v63, %v2575_v1  ;;  %v4242_v54 = vld [vmem:[#allocation10 + $0x70] sm:$0xff]  }
 0x894   : > { %v4243_v17 = vld [vmem:[#allocation10 + $0xf0] sm:$0xff]  }
 0x895   : > { %v2561_v16 = vmul.f32 %v3745_v11, %v2556_v13  ;;  %v4238_v11 = vld [vmem:[#allocation10 + $0x78] sm:$0xff]  }
 0x896   : > { %v4239_v13 = vld [vmem:[#allocation10 + $0xf8] sm:$0xff]  }
 0x897   : > { %v2566_v23 = vadd.f32 %v3746_v15, %v2561_v16  ;;  %v4240_v15 = vld [vmem:[#allocation10 + $0x38] sm:$0xff]  }
 0x898   : > { %v4241_v16 = vld [vmem:[#allocation10 + $0xb8] sm:$0xff]  }
 0x899   : > { %v5207_v53 = vpack.c.bf16 %v2566_v23, %v2566_v23  ;;  %v4246_v23 = vld [vmem:[#allocation10 + $0x68] sm:$0xff]  }
 0x89b   : > { %3027 = vmatmul.mubr.bf16.vlgmr.msra.gmra.mxu1 %v5207_v53  ;;  %3068 = vmatmul.mubr.bf16.vlgmr.msra.gmra.mxu0 %v5207_v53 }
 0x89c   : > { %3077 = vmatpush1.bf16.msra.mxu1 %v3807_v45  ;;  %3118 = vmatpush1.bf16.msra.mxu0 %v3809_v48  ;;  %v3785_v45 = vcombine.low %v2603_v33, %v2607_v34  ;;  %v2591_v48 = vld [vmem:[#allocation8 + $0xb8] sm:$0xff]  ;;  %v4260_v33 = vld [vmem:[#allocation10 + $0x10] sm:$0xff]  }
 0x89d   : > { %3078 = vmatprep.subr.bf16.mxu1 %v3800_v24  ;;  %3119 = vmatprep.subr.bf16.mxu0 %v3802_v26  ;;  %v3770_v50 = vcombine.high %v2587_v44, %v2591_v48  ;;  %v3769_v57 = vcombine.low %v2587_v44, %v2591_v48  ;;  %v4247_v24 = vld [vmem:[#allocation10 + $0xe8] sm:$0xff]   ;;  %v4261_v34 = vld [vmem:[#allocation10 + $0x90] sm:$0xff]  }
 0x89e   : > { %3108 = vmatprep.mubr.bf16.mxu1 %v4572_v22  ;;  %3149 = vmatprep.mubr.bf16.mxu0 %v4572_v22  ;;  %v3778_v22 = vcombine.high %v2595_v39, %v2599_v40  ;;  %v4248_v26 = vld [vmem:[#allocation10 + $0x28] sm:$0xff]   ;;  %v4268_v39 = vld [vmem:[#allocation10] sm:$0xff]  }
 0x89f   : > { %v4269_v40 = vld [vmem:[#allocation10 + $0x80] sm:$0xff]  }
 0x8a0   : > { %3079 = vmatpush1.bf16.msra.mxu1 %v3799_v8  ;;  %3120 = vmatpush1.bf16.msra.mxu0 %v3801_v30  ;;  %v4254_v8 = vld [vmem:[#allocation10 + $0x58] sm:$0xff]  }
 0x8a1   : > { %3080 = vmatprep.subr.bf16.mxu1 %v3792_v6  ;;  %3121 = vmatprep.subr.bf16.mxu0 %v3794_v32  ;;  %v4255_v30 = vld [vmem:[#allocation10 + $0xd8] sm:$0xff]  }
 0x8a2   : > { %v4256_v6 = vld [vmem:[#allocation10 + $0x18] sm:$0xff]  }
 0x8a3   : > { %v4257_v32 = vld [vmem:[#allocation10 + $0x98] sm:$0xff]  }
 0x8a4   : > { %3081 = vmatpush1.bf16.msra.mxu1 %v3791_v35  ;;  %3122 = vmatpush1.bf16.msra.mxu0 %v3793_v14  ;;  %v4262_v35 = vld [vmem:[#allocation10 + $0x48] sm:$0xff]  }
 0x8a5   : > { %3082 = vmatprep.subr.bf16.mxu1 %v3784_v19  ;;  %3123 = vmatprep.subr.bf16.mxu0 %v3786_v37  ;;  %v4263_v14 = vld [vmem:[#allocation10 + $0xc8] sm:$0xff]  }
 0x8a6   : > { %v4264_v19 = vld [vmem:[#allocation10 + $0x8] sm:$0xff]  }
 0x8a7   : > { %v4265_v37 = vld [vmem:[#allocation10 + $0x88] sm:$0xff]  }
 0x8a8   : > { %3083 = vmatpush1.bf16.msra.mxu1 %v3783_v41  ;;  %3124 = vmatpush1.bf16.msra.mxu0 %v3785_v45  ;;  %v2636_v41 = vsub.s32 0, %v4850_v0  ;;  %v2644_v45 = vsub.s32 2, %v4850_v0 }
 0x8a9   : > { %3084 = vmatprep.subr.bf16.mxu1 %v3776_v29  ;;  %3125 = vmatprep.subr.bf16.mxu0 %v3778_v22  ;;  %v2632_v29 = vld [vmem:[#allocation11] sm:$0xff]  ;;  %v2640_v22 = vsub.s32 1, %v4850_v0 }
 0x8aa   : > { %v2637_v47 = vrot.slane %v2632_v29, %v2636_v41  ;;  %v2645_v44 = vrot.slane %v2632_v29, %v2644_v45 }
 0x8ab   : > { %v2641_v48 = vrot.slane %v2632_v29, %v2640_v22 }
 0x8ac   : > { %3085 = vmatpush1.bf16.msra.mxu1 %v3775_v42  ;;  %3126 = vmatpush1.bf16.msra.mxu0 %v3777_v49  ;;  %v2649_v42 = vrot.slane %v2632_v29, %v2648_v46 }
 0x8ad   : > { %3086 = vmatprep.subr.bf16.mxu1 %v3768_v38  ;;  %3127 = vmatprep.subr.bf16.mxu0 %v3770_v50 }
 0x8b0   : > { %3087 = vmatpush1.bf16.msra.mxu1 %v3767_v56  ;;  %3128 = vmatpush1.bf16.msra.mxu0 %v3769_v57 }
 0x8b1   : > { %3088 = vmatprep.subr.bf16.mxu1 %v3760_v59  ;;  %3129 = vmatprep.subr.bf16.mxu0 %v3762_v61 }
 0x8b4   : > { %3089 = vmatpush1.bf16.msra.mxu1 %v3759_v2  ;;  %3130 = vmatpush1.bf16.msra.mxu0 %v3761_v60 }
 0x8b5   : > { %3090 = vmatprep.subr.bf16.mxu1 %v3752_v4  ;;  %3131 = vmatprep.subr.bf16.mxu0 %v3754_v5 }
 0x8b8   : > { %3091 = vmatpush1.bf16.msra.mxu1 %v3751_v7  ;;  %3132 = vmatpush1.bf16.msra.mxu0 %v3753_v10 }
 0x8b9   : > { %3902 = vmatprep.subr.bf16.mxu1 %v4238_v11  ;;  %3924 = vmatprep.subr.bf16.mxu0 %v4239_v13 }
 0x8bb   : > { %3109 = vmatmul.mubr.bf16.vlgmr.msra.gmra.mxu1 %v5207_v53  ;;  %3150 = vmatmul.mubr.bf16.vlgmr.msra.gmra.mxu0 %v5207_v53  ;;  %v4249_v53 = vld [vmem:[#allocation10 + $0xa8] sm:$0xff]  }
 0x8bc   : > { %3903 = vmatpush3.bf16.msra.mxu1 %v4240_v15  ;;  %3925 = vmatpush3.bf16.msra.mxu0 %v4241_v16  ;;  %v2652_v16 = vsub.s32 4, %v4850_v0 }
 0x8bd   : > { %3904 = vmatprep.subr.bf16.mxu1 %v4242_v54  ;;  %3926 = vmatprep.subr.bf16.mxu0 %v4243_v17  ;;  %v2660_v54 = vsub.s32 6, %v4850_v0  ;;  %v2656_v17 = vsub.s32 5, %v4850_v0 }
 0x8c0   : > { %3905 = vmatpush3.bf16.msra.mxu1 %v4244_v20  ;;  %3927 = vmatpush3.bf16.msra.mxu0 %v4245_v21  ;;  %v2664_v20 = vsub.s32 7, %v4850_v0  ;;  %v2653_v21 = vrot.slane %v2632_v29, %v2652_v16 }
 0x8c1   : > { %3906 = vmatprep.subr.bf16.mxu1 %v4246_v23  ;;  %3928 = vmatprep.subr.bf16.mxu0 %v4247_v24 }
 0x8c4   : > { %3907 = vmatpush3.bf16.msra.mxu1 %v4248_v26  ;;  %3929 = vmatpush3.bf16.msra.mxu0 %v4249_v53  ;;  %v2661_v26 = vrot.slane %v2632_v29, %v2660_v54  ;;  %v2657_v53 = vrot.slane %v2632_v29, %v2656_v17 }
 0x8c5   : > { %3908 = vmatprep.subr.bf16.mxu1 %v4250_v27  ;;  %3930 = vmatprep.subr.bf16.mxu0 %v4251_v28 }
 0x8c8   : > { %3909 = vmatpush3.bf16.msra.mxu1 %v4252_v3  ;;  %3931 = vmatpush3.bf16.msra.mxu0 %v4253_v9  ;;  %v2665_v3 = vrot.slane %v2632_v29, %v2664_v20 }
 0x8c9   : > { %3910 = vmatprep.subr.bf16.mxu1 %v4254_v8  ;;  %3932 = vmatprep.subr.bf16.mxu0 %v4255_v30 }
 0x8cc   : > { %3911 = vmatpush3.bf16.msra.mxu1 %v4256_v6  ;;  %3933 = vmatpush3.bf16.msra.mxu0 %v4257_v32 }
 0x8cd   : > { %3912 = vmatprep.subr.bf16.mxu1 %v4258_v12  ;;  %3934 = vmatprep.subr.bf16.mxu0 %v4259_v18 }
 0x8d0   : > { %3913 = vmatpush3.bf16.msra.mxu1 %v4260_v33  ;;  %3935 = vmatpush3.bf16.msra.mxu0 %v4261_v34 }
 0x8d1   : > { %3914 = vmatprep.subr.bf16.mxu1 %v4262_v35  ;;  %3936 = vmatprep.subr.bf16.mxu0 %v4263_v14 }
 0x8d4   : > { %3915 = vmatpush3.bf16.msra.mxu1 %v4264_v19  ;;  %3937 = vmatpush3.bf16.msra.mxu0 %v4265_v37 }
 0x8d5   : > { %3916 = vmatprep.subr.bf16.mxu1 %v4266_v25  ;;  %3938 = vmatprep.subr.bf16.mxu0 %v4267_v31 }
 0x8d8   : > { %3917 = vmatpush3.bf16.msra.mxu1 %v4268_v39  ;;  %3939 = vmatpush3.bf16.msra.mxu0 %v4269_v40 }
 0x95b   : > { %v3028_v49 = vpop.f32.mrf.mxu1  ;;  %v3069_v38 = vpop.f32.mrf.mxu0 }
 0x95c   : > { %v3029_v50 = vadd.f32 %v3028_v49, %v2637_v47  ;;  %v3070_v51 = vadd.f32 %v3069_v38, %v2645_v44 }
 0x95d   : > { %v3030_v43 = vpop.f32.mrf.mxu1  ;;  %v3071_v52 = vpop.f32.mrf.mxu0 }
 0x95e   : > { %v3811_v55 = vmul.f32 -1.442695, %v3029_v50  ;;  %v3813_v56 = vmul.f32 -1.442695, %v3070_v51  ;;  %v3031_v57 = vadd.f32 %v3030_v43, %v2641_v48  ;;  %v3072_v59 = vadd.f32 %v3071_v52, %v2649_v42  ;;  %v3815_v42 = vld [vmem:[%s5272_s5 + $0x5] ss:$0 sm:$0xff] }
 0x95f   : > { %v3032_v61 = vpop.f32.mrf.mxu1  ;;  %v3073_v58 = vpop.f32.mrf.mxu0 }
 0x960   : > { %4306 = vpow2.f32 %v3811_v55  ;;  %v3812_v62 = vmul.f32 -1.442695, %v3031_v57  ;;  %v3814_v63 = vmul.f32 -1.442695, %v3072_v59 }
 0x961   : > { %4308 = vpow2.f32 %v3813_v56  ;;  %v3033_v1 = vpop.f32.mrf.mxu1  ;;  %v3074_v2 = vpop.f32.mrf.mxu0 }
 0x962   : > { %4310 = vpow2.f32 %v3812_v62 }
 0x963   : > { %4312 = vpow2.f32 %v3814_v63 }
 0x96d   : > { %v4307_v60 = vpop.eup %4306 }
 0x96e   : > { %v4309_v4 = vpop.eup %4308  ;;  %v3170_v5 = vadd.f32 1.0, %v4307_v60 }
 0x96f   : > { %v4311_v7 = vpop.eup %4310  ;;  %v3172_v10 = vadd.f32 1.0, %v4309_v4 }
 0x970   : > { %v4313_v11 = vpop.eup %4312  ;;  %4314 = vrcp.f32 %v3170_v5  ;;  %v3171_v13 = vadd.f32 1.0, %v4311_v7 }
 0x971   : > { %4316 = vrcp.f32 %v3172_v10  ;;  %v3173_v15 = vadd.f32 1.0, %v4313_v11 }
 0x972   : > { %4318 = vrcp.f32 %v3171_v13 }
 0x973   : > { %4320 = vrcp.f32 %v3173_v15 }
 0x97b   : > { %v3110_v23 = vpop.f32.mrf.mxu1  ;;  %v3151_v24 = vpop.f32.mrf.mxu0 }
 0x97c   : > { %v3111_v12 = vadd.f32 %v3110_v23, %v2653_v21  ;;  %v3152_v14 = vadd.f32 %v3151_v24, %v2661_v26 }
 0x97d   : > { %v4315_v27 = vpop.eup %4314  ;;  %v3112_v28 = vpop.f32.mrf.mxu1 }
 0x97e   : > { %v3153_v9 = vpop.f32.mrf.mxu0  ;;  %v4317_v8 = vpop.eup %4316  ;;  %v3182_v30 = vmul.f32 %v4315_v27, %v3029_v50  ;;  %v3113_v0 = vadd.f32 %v3112_v28, %v2657_v53 }
 0x97f   : > { %v4319_v6 = vpop.eup %4318  ;;  %v3184_v32 = vmul.f32 %v4317_v8, %v3070_v51  ;;  %v3114_v18 = vpop.f32.mrf.mxu1  ;;  %v3154_v25 = vadd.f32 %v3153_v9, %v2665_v3 }
 0x980   : > { %v3155_v33 = vpop.f32.mrf.mxu0  ;;  %v4321_v34 = vpop.eup %4320  ;;  %v3183_v35 = vmul.f32 %v4319_v6, %v3031_v57  ;;  %v3186_v37 = vmul.f32 %v3182_v30, %v3111_v12 }
 0x981   : > { %v3185_v19 = vmul.f32 %v4321_v34, %v3072_v59  ;;  %v3115_v31 = vpop.f32.mrf.mxu1  ;;  %v3188_v40 = vmul.f32 %v3184_v32, %v3152_v14 }
 0x982   : > { %v3156_v39 = vpop.f32.mrf.mxu0  ;;  %v3187_v41 = vmul.f32 %v3183_v35, %v3113_v0  ;;  %v3190_v22 = vpack.c.bf16 %v3186_v37, %v3186_v37 }
 0x983   : > { %v3189_v45 = vmul.f32 %v3185_v19, %v3154_v25  ;;  %v3192_v47 = vpack.c.bf16 %v3188_v40, %v3188_v40 }
 0x984   : > { %v3191_v29 = vpack.c.bf16 %v3187_v41, %v3187_v41 }
 0x985   : > { %v3193_v46 = vpack.c.bf16 %v3189_v45, %v3189_v45 }
 0x986   : > { %3486 = vmatprep.mubr.bf16.mxu1 %v3191_v29 }
 0x987   : > { %3526 = vmatprep.mubr.bf16.mxu0 %v3193_v46  ;;  %3487 = vmatmul.mubr.bf16.vlgmr.msra.gmra.mxu1 %v3190_v22 }
 0x988   : > { %3527 = vmatmul.mubr.bf16.vlgmr.msra.gmra.mxu0 %v3192_v47 }
 0xa47   : > { %v3918_v44 = vpop.f32.mrf.mxu1 }
 0xa48   : > { %v3940_v48 = vpop.f32.mrf.mxu0 }
 0xa49   : > { %v3919_v49 = vpop.f32.mrf.mxu1 }
 0xa4a   : > { %v3920_v38 = vadd.f32 %v3919_v49, %v3918_v44  ;;  %v3941_v50 = vpop.f32.mrf.mxu0 }
 0xa4b   : > { %v3921_v51 = vpop.f32.mrf.mxu1  ;;  %v3942_v52 = vadd.f32 %v3941_v50, %v3940_v48 }
 0xa4c   : > { %v3489_v43 = vadd.f32 %v3920_v38, %v3815_v42  ;;  %v3943_v55 = vpop.f32.mrf.mxu0 }
 0xa4d   : > { %v3922_v56 = vpop.f32.mrf.mxu1 }
 0xa4e   : > { %v3529_v57 = vadd.f32 %v3942_v52, %v3489_v43  ;;  %v3944_v59 = vpop.f32.mrf.mxu0 }
 0xa50   : > { %v3534_v61 = vadd.f32 %v3529_v57, %v5176_v36 }
 0xa52   : > { %3535 = vst [vmem:[%s364_s19] sm:$0xff] %v3534_v61 }
 0xa53   : > { %4494 = shalt.err (!%p4491_p5)
}
 0xa54   : > { %s4495_s8 = scalar_lea.hbm %s3548_s13, 128  ;;  %s4499_s22 = scalar_lea.hbm %s5274_s7, 256 }
 0xa55   : > { %p4496_p6 = scmp.ne.s32.totalorder %s3548_s13, %s4495_s8  ;;  %p4500_p1 = scmp.lt.s32.totalorder %s3548_s13, %s5274_s7 }
 0xa56   : > { %p4501_p7 = scmp.lt.s32.totalorder %s4499_s22, %s4495_s8 }
 0xa57   : > { %p4497_p10 = pnand %p4496_p6, %p5299_p2 }
 0xa58   : > { %p4502_p13 = por %p4501_p7, %p4500_p1 }
 0xa59   : > { %p4498_p11 = pneg %p4497_p10 }
 0xa5b   : > { %p4503_p0 = pnand %p4502_p13, %p4498_p11 }
 0xa5d   : > { %4506 = shalt.err (!%p4503_p0)
}
 0xa5e   : > { %4104 = dma.vmem_to_hbm [thread:$0]  (%p5299_p2), %s3551_s20, 128, %s3548_s13, %s3537_s10  }
 0xa5f PF: > { %s3562_s14 = sand.u32 1, %s4545_s24   ;;  %p5300_p8 = scmp.ne.s32.totalorder %s5289_s17, 0 }
 0xa60   : > { %p5301_p9 = scmp.ge.s32.totalorder %s4557_s27, 2  ;;  %s3563_s19 = scalar_lea.sflag [#allocation4], %s3562_s14 }
 0xa62   : > { %p4127_p12 = pnand %p5301_p9, %p5300_p8 }
 0xa64   : > { %p4128_p3 = pneg %p4127_p12 }
 0xa66   : > { %4540 = dma.done.wait (%p4128_p3), %s3563_s19, 128  }
 0xa67   : > { %4542 = vsyncadd (%p4128_p3), %s3563_s19, 4294967168  ;;  %p23_p4 = scmp.ge.s32.totalorder %s4717_s11, 4   ;;  %s5302_s24 = smov %s4549_s25 }
 0xa68   : > { %s5303_s25 = smov %s4553_s26  ;;  %s5304_s26 = smov %s4729_s12 }
 0xa69   : > { %s5305_s27 = smov %s4717_s11  ;;  %25 = sbr.rel (!%p23_p4) target bundleno = 11 (0xb), region = 113 }
 0xa6e   :  { %3568 = vsyncpa [#allocation3], 1 }
 0xa6f   :  { %3570 = vsyncpa [#allocation3 + $0x1], 1 }
 0xa70   :  { %3571 = vsyncpa [#allocation6], 1 }
 0xa71   :  { %3572 = vsyncpa [#allocation9], 1 }
 0xa72   :  { %3573 = vsyncpa [#allocation12], 1 }
 0xa73   :  { %3574 = vsyncpa [#allocation4], 1 }
 0xa74   :  { %3576 = vsyncpa [#allocation4 + $0x1], 1 }

</bundles_post_ra>
